<compile_context>
chip_gen: v7x
topology: tpu7x:2x2x1
jax: 0.10.0
libtpu: 0.0.40
codegen_flags: <defaults>
</compile_context>

<pallas_src>
import functools

import jax
import jax.numpy as jnp
from jax import lax
from jax.experimental import pallas as pl
from jax.experimental.pallas import tpu as pltpu

EPS = 1e-5   # InstanceNorm1d default eps
KS = 3       # conv kernel size


# ----------------------------- Pallas kernel ------------------------------ #

def resnet_block_kernel(x_ref, w1_ref, w2_ref, ml_ref, mr_ref, seg_ref, segt_ref,
                        o_ref, *, seg_len):
    x = x_ref[...]                           # (C, W); W = TB * seg_len
    C, W = x.shape

    # Resident constants (constant index_map -> DMA'd once, reused every step).
    left_edge = ml_ref[...] != 0.0           # (C, W) bool: position 0 of a sample
    right_edge = mr_ref[...] != 0.0          # (C, W) bool: position L-1 of a sample
    seg = seg_ref[...]                       # (W, TB) f32 one-hot (exact)
    seg_t = segt_ref[...]                    # (TB, W) f32 one-hot
    inv_len = jnp.float32(1.0 / seg_len)

    def conv(h, w_ref):
        # ReflectionPad1d(1) + Conv1d(k=3), fused:
        #   neighbours via XLU rolls + edge fix, then 3 accumulated MXU dots
        #   (no (3C, W) concat slab -> no vector-store copies).
        wl = w_ref[0]
        wc = w_ref[1]
        wr = w_ref[2]
        mm_dt = wl.dtype
        hp = pltpu.roll(h, 1, axis=1)        # hp[:, i] = h[:, i-1]  (circular)
        hm = pltpu.roll(h, W - 1, axis=1)    # hm[:, i] = h[:, i+1]  (circular)
        lft = jnp.where(left_edge, hm, hp)   # l-1 neighbour with reflection
        rgt = jnp.where(right_edge, hp, hm)  # l+1 neighbour with reflection
        y = jnp.dot(wl, lft.astype(mm_dt), preferred_element_type=jnp.float32)
        y = y + jnp.dot(wc, h.astype(mm_dt), preferred_element_type=jnp.float32)
        y = y + jnp.dot(wr, rgt.astype(mm_dt), preferred_element_type=jnp.float32)
        # Conv bias intentionally omitted: the affine-free InstanceNorm that
        # follows cancels a per-channel constant exactly (IN(y + b) == IN(y)).
        return y                              # (C, W) f32

    def inst_norm(y):
        # Single-pass per-(sample, channel) sum / sumsq on the MXU (f32 stats
        # to avoid cancellation); normalization broadcast back via seg^T.
        s1 = jnp.dot(y, seg, preferred_element_type=jnp.float32)        # (C, TB)
        s2 = jnp.dot(y * y, seg, preferred_element_type=jnp.float32)    # (C, TB)
        mean = s1 * inv_len
        var = jnp.maximum(s2 * inv_len - mean * mean, 0.0)
        istd = lax.rsqrt(var + EPS)                                     # EUP
        scale_b = jnp.dot(istd, seg_t, preferred_element_type=jnp.float32)        # (C, W)
        shift_b = jnp.dot(mean * istd, seg_t, preferred_element_type=jnp.float32)  # (C, W)
        return y * scale_b - shift_b

    h = inst_norm(conv(x, w1_ref))           # Conv1d #1 + InstanceNorm #1
    h = jnp.maximum(h, 0.0)                  # ReLU(True), stays f32 (v5e-safe)
    h = inst_norm(conv(h, w2_ref))           # Conv1d #2 + InstanceNorm #2
    # TODO(synk): nn.Dropout(0.5) path (use_dropout=True) not implemented;
    # the implemented configuration uses use_dropout=False.
    o_ref[...] = (x.astype(jnp.float32) + h).astype(o_ref.dtype)   # skip connection


# ------------------------------- wrapper ----------------------------------- #

def _round_up(v, m):
    return (v + m - 1) // m * m


def _vmem_bytes(C, tb, L, x_bytes, mm_bytes):
    """Rough upper bound on VMEM for one grid step: double-buffered activation
    blocks, resident constants (incl. the quadratic-in-tb seg matrices with
    lane/sublane padding) and live f32 temporaries in the body."""
    W = tb * L
    Cp = _round_up(C, 8)
    Wp = _round_up(W, 128)
    slab = Cp * Wp                                     # padded (C, W) tile (elems)
    act = 2 * 2 * slab * x_bytes                       # in + out blocks, x2 buffers
    masks = 2 * 2 * slab * 4                           # two f32 edge masks
    seg = 2 * (_round_up(W, 8) * _round_up(tb, 128)    # seg  (W, tb) lane-padded
               + _round_up(tb, 8) * Wp) * 4            # segT (tb, W)
    weights = 2 * 2 * KS * _round_up(C, 8) * _round_up(C, 128) * mm_bytes
    temps = 14 * slab * 4                              # live f32 temporaries
    return act + masks + seg + weights + temps


def _pick_tb(N, C, L, x_bytes, mm_bytes, budget_bytes, min_lanes=2048):
    """Pick the batch tile: divides N, lane-aligned (tb*L % 128 == 0 or full),
    fits the VMEM budget. Prefer >=2 grid steps when per-step tiles stay large
    (v7x megacore); otherwise take the single largest tile (small problems are
    fixed-overhead bound, and extra steps on single-TC v5e/v6e only add cost)."""
    valid = []
    for tb in range(1, N + 1):
        if N % tb:
            continue
        if (tb * L) % 128 != 0 and tb != N:
            continue
        if _vmem_bytes(C, tb, L, x_bytes, mm_bytes) > budget_bytes:
            continue
        valid.append(tb)
    if not valid:
        return next(tb for tb in range(1, N + 1)
                    if N % tb == 0 and ((tb * L) % 128 == 0 or tb == N))
    multi = [tb for tb in valid if N // tb >= 2 and tb * L >= min_lanes]
    if multi:
        return max(multi)
    return max(valid)


def resnet_block(x, w1_oik, b1, w2_oik, b2, *, matmul_dtype=jnp.bfloat16, tb=None):
    """x: (N, C, L); w*_oik: (Cout, Cin, K) PyTorch Conv1d layout; b*: (Cout,).

    Conv biases are accepted for signature parity with the PyTorch module but
    are mathematically absorbed by the affine-free InstanceNorm that follows
    each conv, so they are not passed into the kernel."""
    N, C, L = x.shape
    assert L >= 2, "ReflectionPad1d(1) requires length >= 2"
    del b1, b2  # exactly cancelled by InstanceNorm's mean subtraction
    dt = x.dtype
    x_bytes = jnp.dtype(dt).itemsize
    mm_bytes = jnp.dtype(matmul_dtype).itemsize

    # VMEM budget / limit from the actual chip (64 MiB v7x, 128 MiB v5e/v6e).
    try:
        vmem_cap = int(pltpu.get_tpu_info().vmem_capacity_bytes)
    except Exception:
        vmem_cap = 64 << 20
    vmem_limit = min(int(0.75 * vmem_cap), 112 << 20)

    if tb is None:
        tb = _pick_tb(N, C, L, x_bytes, mm_bytes, budget_bytes=int(0.8 * vmem_limit))
    assert N % tb == 0
    W = tb * L
    steps = N // tb

    # Conv weights, taps stacked as (K, Cout, Cin) = [left | center | right],
    # stored in the MXU compute dtype (bf16 native path; f32 accumulation).
    w1s = jnp.transpose(w1_oik, (2, 0, 1)).astype(matmul_dtype)
    w2s = jnp.transpose(w2_oik, (2, 0, 1)).astype(matmul_dtype)

    # Lane-dense activation slab: (C, N*L), samples contiguous along lanes.
    xs = jnp.transpose(x, (1, 0, 2)).reshape(C, N * L)

    # Hoisted constants (resident in VMEM via constant index_map):
    col = jnp.arange(W, dtype=jnp.int32) % L
    mask_l = jnp.broadcast_to((col == 0).astype(jnp.float32), (C, W))
    mask_r = jnp.broadcast_to((col == L - 1).astype(jnp.float32), (C, W))
    sample_of_col = jnp.arange(W, dtype=jnp.int32) // L
    seg = (sample_of_col[:, None]
           == jnp.arange(tb, dtype=jnp.int32)[None, :]).astype(jnp.float32)  # (W, tb)
    seg_t = seg.T                                                            # (tb, W)

    # Advisory cost estimate for XLA's scheduler.
    flops = steps * (12 * C * C * W + 16 * C * W * tb + 24 * C * W)
    transcendentals = steps * 2 * C * tb
    bytes_accessed = (2 * N * C * L * x_bytes + 2 * KS * C * C * mm_bytes
                      + 2 * C * W * 4 + 2 * W * tb * 4)

    out = pl.pallas_call(
        functools.partial(resnet_block_kernel, seg_len=L),
        out_shape=jax.ShapeDtypeStruct((C, N * L), dt),
        grid=(steps,),
        in_specs=[
            pl.BlockSpec((C, W), lambda i: (0, i)),          # activations tile
            pl.BlockSpec((KS, C, C), lambda i: (0, 0, 0)),   # conv1 taps (resident)
            pl.BlockSpec((KS, C, C), lambda i: (0, 0, 0)),   # conv2 taps (resident)
            pl.BlockSpec((C, W), lambda i: (0, 0)),          # left-edge mask (resident)
            pl.BlockSpec((C, W), lambda i: (0, 0)),          # right-edge mask (resident)
            pl.BlockSpec((W, tb), lambda i: (0, 0)),         # seg one-hot (resident)
            pl.BlockSpec((tb, W), lambda i: (0, 0)),         # seg^T one-hot (resident)
        ],
        out_specs=pl.BlockSpec((C, W), lambda i: (0, i)),
        compiler_params=pltpu.CompilerParams(
            dimension_semantics=("parallel",),
            vmem_limit_bytes=vmem_limit),
        cost_estimate=pl.CostEstimate(
            flops=flops, transcendentals=transcendentals,
            bytes_accessed=bytes_accessed),
    )(xs, w1s, w2s, mask_l, mask_r, seg, seg_t)

    return jnp.transpose(out.reshape(C, N, L), (1, 0, 2))


# --------------------------- pure-JAX reference ---------------------------- #

def _ref_forward(x, w1_oik, b1, w2_oik, b2):
    def block(h, w, b):
        hp = jnp.pad(h, ((0, 0), (0, 0), (1, 1)), mode="reflect")
        y = lax.conv_general_dilated(
            hp, w, window_strides=(1,), padding="VALID",
            dimension_numbers=("NCH", "OIH", "NCH"))
        y = y + b[None, :, None]
        mean = jnp.mean(y, axis=-1, keepdims=True)
        var = jnp.mean((y - mean) ** 2, axis=-1, keepdims=True)
        return (y - mean) * lax.rsqrt(var + EPS)

    h = jnp.maximum(block(x, w1_oik, b1), 0.0)
    h = block(h, w2_oik, b2)
    return x + h


# --------------------------------- main ------------------------------------ #

if __name__ == "__main__":
    N, C, L = 4, 16, 128  # batch, dim (channels), sequence length
    key = jax.random.PRNGKey(0)
    kx, kw1, kb1, kw2, kb2 = jax.random.split(key, 5)

    x = jax.random.normal(kx, (N, C, L), jnp.float32)
    # PyTorch Conv1d weight layout: (Cout, Cin, K); bias: (Cout,)
    w1 = 0.1 * jax.random.normal(kw1, (C, C, KS), jnp.float32)
    b1 = 0.1 * jax.random.normal(kb1, (C,), jnp.float32)
    w2 = 0.1 * jax.random.normal(kw2, (C, C, KS), jnp.float32)
    b2 = 0.1 * jax.random.normal(kb2, (C,), jnp.float32)

    ref = _ref_forward(x, w1, b1, w2, b2)

    # Exact-precision path (f32 matmuls): tight tolerance vs the f32 reference.
    out_f32 = jax.block_until_ready(
        resnet_block(x, w1, b1, w2, b2, matmul_dtype=jnp.float32))
    assert out_f32.shape == (N, C, L)
    err32 = float(jnp.max(jnp.abs(out_f32 - ref)))
    assert jnp.allclose(out_f32, ref, atol=2e-4, rtol=2e-4), \
        f"f32 path mismatch vs reference: {err32}"

    # Performance path (default): bf16 MXU matmuls with f32 accumulation.
    out_bf16 = jax.block_until_ready(resnet_block(x, w1, b1, w2, b2))
    assert out_bf16.shape == (N, C, L)
    errbf = float(jnp.max(jnp.abs(out_bf16 - ref)))
    assert jnp.allclose(out_bf16, ref, atol=5e-2, rtol=5e-2), \
        f"bf16 path mismatch vs reference: {errbf}"

    print("KERNEL_OK")
</pallas_src>

<mosaic_0001>
module attributes {stable_mosaic.version = 11 : i64} {
  func.func @resnet_block_kernel(%arg0: i32, %arg1: memref<16x512xf32, #tpu.memory_space<vmem>>, %arg2: memref<3x16x16xf32, #tpu.memory_space<vmem>>, %arg3: memref<3x16x16xf32, #tpu.memory_space<vmem>>, %arg4: memref<16x512xf32, #tpu.memory_space<vmem>>, %arg5: memref<16x512xf32, #tpu.memory_space<vmem>>, %arg6: memref<512x4xf32, #tpu.memory_space<vmem>>, %arg7: memref<4x512xf32, #tpu.memory_space<vmem>>, %arg8: memref<16x512xf32, #tpu.memory_space<vmem>>) attributes {dimension_semantics = [#tpu.dimension_semantics<parallel>], iteration_bounds = array<i64: 1>, scalar_prefetch = 0 : i64, scratch_operands = 0 : i64, tpu.core_type = #tpu.core_type<tc>, window_params = [{transform_indices = @transform_0, window_bounds = array<i64: 16, 512>}, {pipeline_mode = #tpu.pipeline_mode<synchronous>, transform_indices = @transform_1, window_bounds = array<i64: 3, 16, 16>}, {pipeline_mode = #tpu.pipeline_mode<synchronous>, transform_indices = @transform_2, window_bounds = array<i64: 3, 16, 16>}, {pipeline_mode = #tpu.pipeline_mode<synchronous>, transform_indices = @transform_3, window_bounds = array<i64: 16, 512>}, {pipeline_mode = #tpu.pipeline_mode<synchronous>, transform_indices = @transform_4, window_bounds = array<i64: 16, 512>}, {pipeline_mode = #tpu.pipeline_mode<synchronous>, transform_indices = @transform_5, window_bounds = array<i64: 512, 4>}, {pipeline_mode = #tpu.pipeline_mode<synchronous>, transform_indices = @transform_6, window_bounds = array<i64: 4, 512>}, {transform_indices = @transform_7, window_bounds = array<i64: 16, 512>}]} {
    %c0 = arith.constant 0 : index
    %c0_0 = arith.constant 0 : index
    %0 = vector.load %arg1[%c0, %c0_0] : memref<16x512xf32, #tpu.memory_space<vmem>>, vector<16x512xf32>
    %c0_1 = arith.constant 0 : index
    %c0_2 = arith.constant 0 : index
    %1 = vector.load %arg4[%c0_1, %c0_2] : memref<16x512xf32, #tpu.memory_space<vmem>>, vector<16x512xf32>
    %cst = arith.constant 0.000000e+00 : f32
    %2 = vector.broadcast %cst : f32 to vector<16x512xf32>
    %3 = arith.cmpf one, %1, %2 : vector<16x512xf32>
    %c0_3 = arith.constant 0 : index
    %c0_4 = arith.constant 0 : index
    %4 = vector.load %arg5[%c0_3, %c0_4] : memref<16x512xf32, #tpu.memory_space<vmem>>, vector<16x512xf32>
    %cst_5 = arith.constant 0.000000e+00 : f32
    %5 = vector.broadcast %cst_5 : f32 to vector<16x512xf32>
    %6 = arith.cmpf one, %4, %5 : vector<16x512xf32>
    %c0_6 = arith.constant 0 : index
    %c0_7 = arith.constant 0 : index
    %7 = vector.load %arg6[%c0_6, %c0_7] : memref<512x4xf32, #tpu.memory_space<vmem>>, vector<512x4xf32>
    %c0_8 = arith.constant 0 : index
    %c0_9 = arith.constant 0 : index
    %8 = vector.load %arg7[%c0_8, %c0_9] : memref<4x512xf32, #tpu.memory_space<vmem>>, vector<4x512xf32>
    %c0_10 = arith.constant 0 : index
    %c0_11 = arith.constant 0 : index
    %c0_12 = arith.constant 0 : index
    %9 = vector.load %arg2[%c0_10, %c0_11, %c0_12] : memref<3x16x16xf32, #tpu.memory_space<vmem>>, vector<1x16x16xf32>
    %10 = vector.shape_cast %9 : vector<1x16x16xf32> to vector<16x16xf32>
    %c1 = arith.constant 1 : index
    %c0_13 = arith.constant 0 : index
    %c0_14 = arith.constant 0 : index
    %11 = vector.load %arg2[%c1, %c0_13, %c0_14] : memref<3x16x16xf32, #tpu.memory_space<vmem>>, vector<1x16x16xf32>
    %12 = vector.shape_cast %11 : vector<1x16x16xf32> to vector<16x16xf32>
    %c2 = arith.constant 2 : index
    %c0_15 = arith.constant 0 : index
    %c0_16 = arith.constant 0 : index
    %13 = vector.load %arg2[%c2, %c0_15, %c0_16] : memref<3x16x16xf32, #tpu.memory_space<vmem>>, vector<1x16x16xf32>
    %14 = vector.shape_cast %13 : vector<1x16x16xf32> to vector<16x16xf32>
    %c1_i32 = arith.constant 1 : i32
    %15 = tpu.dynamic_rotate %0 by %c1_i32 dim 1 : vector<16x512xf32>, i32 -> vector<16x512xf32>
    %c511_i32 = arith.constant 511 : i32
    %16 = tpu.dynamic_rotate %0 by %c511_i32 dim 1 : vector<16x512xf32>, i32 -> vector<16x512xf32>
    %17 = arith.select %3, %16, %15 : vector<16x512xi1>, vector<16x512xf32>
    %18 = arith.select %6, %15, %16 : vector<16x512xi1>, vector<16x512xf32>
    %cst_17 = arith.constant dense<0.000000e+00> : vector<16x512xf32>
    %19 = tpu.matmul %10, %17, %cst_17 {dimension_numbers = #tpu.dot_dimension_numbers<[1], [0], [0], [1], [0, 0, 1, 1], [], []>} : vector<16x16xf32>, vector<16x512xf32>, vector<16x512xf32> -> vector<16x512xf32>
    %cst_18 = arith.constant dense<0.000000e+00> : vector<16x512xf32>
    %20 = tpu.matmul %12, %0, %cst_18 {dimension_numbers = #tpu.dot_dimension_numbers<[1], [0], [0], [1], [0, 0, 1, 1], [], []>} : vector<16x16xf32>, vector<16x512xf32>, vector<16x512xf32> -> vector<16x512xf32>
    %21 = arith.addf %19, %20 : vector<16x512xf32>
    %cst_19 = arith.constant dense<0.000000e+00> : vector<16x512xf32>
    %22 = tpu.matmul %14, %18, %cst_19 {dimension_numbers = #tpu.dot_dimension_numbers<[1], [0], [0], [1], [0, 0, 1, 1], [], []>} : vector<16x16xf32>, vector<16x512xf32>, vector<16x512xf32> -> vector<16x512xf32>
    %23 = arith.addf %21, %22 : vector<16x512xf32>
    %cst_20 = arith.constant dense<0.000000e+00> : vector<16x4xf32>
    %24 = tpu.matmul %23, %7, %cst_20 {dimension_numbers = #tpu.dot_dimension_numbers<[1], [0], [0], [1], [0, 0, 1, 1], [], []>} : vector<16x512xf32>, vector<512x4xf32>, vector<16x4xf32> -> vector<16x4xf32>
    %25 = arith.mulf %23, %23 : vector<16x512xf32>
    %cst_21 = arith.constant dense<0.000000e+00> : vector<16x4xf32>
    %26 = tpu.matmul %25, %7, %cst_21 {dimension_numbers = #tpu.dot_dimension_numbers<[1], [0], [0], [1], [0, 0, 1, 1], [], []>} : vector<16x512xf32>, vector<512x4xf32>, vector<16x4xf32> -> vector<16x4xf32>
    %cst_22 = arith.constant 7.812500e-03 : f32
    %27 = vector.broadcast %cst_22 : f32 to vector<16x4xf32>
    %28 = arith.mulf %24, %27 : vector<16x4xf32>
    %cst_23 = arith.constant 7.812500e-03 : f32
    %29 = vector.broadcast %cst_23 : f32 to vector<16x4xf32>
    %30 = arith.mulf %26, %29 : vector<16x4xf32>
    %31 = arith.mulf %28, %28 : vector<16x4xf32>
    %32 = arith.subf %30, %31 : vector<16x4xf32>
    %cst_24 = arith.constant 0.000000e+00 : f32
    %33 = vector.broadcast %cst_24 : f32 to vector<16x4xf32>
    %34 = arith.maximumf %32, %33 : vector<16x4xf32>
    %cst_25 = arith.constant 9.99999974E-6 : f32
    %35 = vector.broadcast %cst_25 : f32 to vector<16x4xf32>
    %36 = arith.addf %34, %35 : vector<16x4xf32>
    %37 = math.rsqrt %36 : vector<16x4xf32>
    %cst_26 = arith.constant dense<0.000000e+00> : vector<16x512xf32>
    %38 = tpu.matmul %37, %8, %cst_26 {dimension_numbers = #tpu.dot_dimension_numbers<[1], [0], [0], [1], [0, 0, 1, 1], [], []>} : vector<16x4xf32>, vector<4x512xf32>, vector<16x512xf32> -> vector<16x512xf32>
    %39 = arith.mulf %28, %37 : vector<16x4xf32>
    %cst_27 = arith.constant dense<0.000000e+00> : vector<16x512xf32>
    %40 = tpu.matmul %39, %8, %cst_27 {dimension_numbers = #tpu.dot_dimension_numbers<[1], [0], [0], [1], [0, 0, 1, 1], [], []>} : vector<16x4xf32>, vector<4x512xf32>, vector<16x512xf32> -> vector<16x512xf32>
    %41 = arith.mulf %23, %38 : vector<16x512xf32>
    %42 = arith.subf %41, %40 : vector<16x512xf32>
    %cst_28 = arith.constant 0.000000e+00 : f32
    %43 = vector.broadcast %cst_28 : f32 to vector<16x512xf32>
    %44 = arith.maximumf %42, %43 : vector<16x512xf32>
    %c0_29 = arith.constant 0 : index
    %c0_30 = arith.constant 0 : index
    %c0_31 = arith.constant 0 : index
    %45 = vector.load %arg3[%c0_29, %c0_30, %c0_31] : memref<3x16x16xf32, #tpu.memory_space<vmem>>, vector<1x16x16xf32>
    %46 = vector.shape_cast %45 : vector<1x16x16xf32> to vector<16x16xf32>
    %c1_32 = arith.constant 1 : index
    %c0_33 = arith.constant 0 : index
    %c0_34 = arith.constant 0 : index
    %47 = vector.load %arg3[%c1_32, %c0_33, %c0_34] : memref<3x16x16xf32, #tpu.memory_space<vmem>>, vector<1x16x16xf32>
    %48 = vector.shape_cast %47 : vector<1x16x16xf32> to vector<16x16xf32>
    %c2_35 = arith.constant 2 : index
    %c0_36 = arith.constant 0 : index
    %c0_37 = arith.constant 0 : index
    %49 = vector.load %arg3[%c2_35, %c0_36, %c0_37] : memref<3x16x16xf32, #tpu.memory_space<vmem>>, vector<1x16x16xf32>
    %50 = vector.shape_cast %49 : vector<1x16x16xf32> to vector<16x16xf32>
    %c1_i32_38 = arith.constant 1 : i32
    %51 = tpu.dynamic_rotate %44 by %c1_i32_38 dim 1 : vector<16x512xf32>, i32 -> vector<16x512xf32>
    %c511_i32_39 = arith.constant 511 : i32
    %52 = tpu.dynamic_rotate %44 by %c511_i32_39 dim 1 : vector<16x512xf32>, i32 -> vector<16x512xf32>
    %53 = arith.select %3, %52, %51 : vector<16x512xi1>, vector<16x512xf32>
    %54 = arith.select %6, %51, %52 : vector<16x512xi1>, vector<16x512xf32>
    %cst_40 = arith.constant dense<0.000000e+00> : vector<16x512xf32>
    %55 = tpu.matmul %46, %53, %cst_40 {dimension_numbers = #tpu.dot_dimension_numbers<[1], [0], [0], [1], [0, 0, 1, 1], [], []>} : vector<16x16xf32>, vector<16x512xf32>, vector<16x512xf32> -> vector<16x512xf32>
    %cst_41 = arith.constant dense<0.000000e+00> : vector<16x512xf32>
    %56 = tpu.matmul %48, %44, %cst_41 {dimension_numbers = #tpu.dot_dimension_numbers<[1], [0], [0], [1], [0, 0, 1, 1], [], []>} : vector<16x16xf32>, vector<16x512xf32>, vector<16x512xf32> -> vector<16x512xf32>
    %57 = arith.addf %55, %56 : vector<16x512xf32>
    %cst_42 = arith.constant dense<0.000000e+00> : vector<16x512xf32>
    %58 = tpu.matmul %50, %54, %cst_42 {dimension_numbers = #tpu.dot_dimension_numbers<[1], [0], [0], [1], [0, 0, 1, 1], [], []>} : vector<16x16xf32>, vector<16x512xf32>, vector<16x512xf32> -> vector<16x512xf32>
    %59 = arith.addf %57, %58 : vector<16x512xf32>
    %cst_43 = arith.constant dense<0.000000e+00> : vector<16x4xf32>
    %60 = tpu.matmul %59, %7, %cst_43 {dimension_numbers = #tpu.dot_dimension_numbers<[1], [0], [0], [1], [0, 0, 1, 1], [], []>} : vector<16x512xf32>, vector<512x4xf32>, vector<16x4xf32> -> vector<16x4xf32>
    %61 = arith.mulf %59, %59 : vector<16x512xf32>
    %cst_44 = arith.constant dense<0.000000e+00> : vector<16x4xf32>
    %62 = tpu.matmul %61, %7, %cst_44 {dimension_numbers = #tpu.dot_dimension_numbers<[1], [0], [0], [1], [0, 0, 1, 1], [], []>} : vector<16x512xf32>, vector<512x4xf32>, vector<16x4xf32> -> vector<16x4xf32>
    %cst_45 = arith.constant 7.812500e-03 : f32
    %63 = vector.broadcast %cst_45 : f32 to vector<16x4xf32>
    %64 = arith.mulf %60, %63 : vector<16x4xf32>
    %cst_46 = arith.constant 7.812500e-03 : f32
    %65 = vector.broadcast %cst_46 : f32 to vector<16x4xf32>
    %66 = arith.mulf %62, %65 : vector<16x4xf32>
    %67 = arith.mulf %64, %64 : vector<16x4xf32>
    %68 = arith.subf %66, %67 : vector<16x4xf32>
    %cst_47 = arith.constant 0.000000e+00 : f32
    %69 = vector.broadcast %cst_47 : f32 to vector<16x4xf32>
    %70 = arith.maximumf %68, %69 : vector<16x4xf32>
    %cst_48 = arith.constant 9.99999974E-6 : f32
    %71 = vector.broadcast %cst_48 : f32 to vector<16x4xf32>
    %72 = arith.addf %70, %71 : vector<16x4xf32>
    %73 = math.rsqrt %72 : vector<16x4xf32>
    %cst_49 = arith.constant dense<0.000000e+00> : vector<16x512xf32>
    %74 = tpu.matmul %73, %8, %cst_49 {dimension_numbers = #tpu.dot_dimension_numbers<[1], [0], [0], [1], [0, 0, 1, 1], [], []>} : vector<16x4xf32>, vector<4x512xf32>, vector<16x512xf32> -> vector<16x512xf32>
    %75 = arith.mulf %64, %73 : vector<16x4xf32>
    %cst_50 = arith.constant dense<0.000000e+00> : vector<16x512xf32>
    %76 = tpu.matmul %75, %8, %cst_50 {dimension_numbers = #tpu.dot_dimension_numbers<[1], [0], [0], [1], [0, 0, 1, 1], [], []>} : vector<16x4xf32>, vector<4x512xf32>, vector<16x512xf32> -> vector<16x512xf32>
    %77 = arith.mulf %59, %74 : vector<16x512xf32>
    %78 = arith.subf %77, %76 : vector<16x512xf32>
    %79 = arith.addf %0, %78 : vector<16x512xf32>
    %c0_51 = arith.constant 0 : index
    %c0_52 = arith.constant 0 : index
    %80 = vector.load %arg8[%c0_51, %c0_52] : memref<16x512xf32, #tpu.memory_space<vmem>>, vector<16x512xf32>
    tpu.vector_store %arg8[%c0_51, %c0_52], %79 {strides = array<i32>} : memref<16x512xf32, #tpu.memory_space<vmem>>, vector<16x512xf32>,
    return
  }
  func.func @transform_0(%arg0: i32) -> (i32, i32) {
    %c0_i32 = arith.constant 0 : i32
    %c0_i32_0 = arith.constant 0 : i32
    return %c0_i32, %arg0 : i32, i32
  }
  func.func @transform_1(%arg0: i32) -> (i32, i32, i32) {
    %c0_i32 = arith.constant 0 : i32
    %c0_i32_0 = arith.constant 0 : i32
    %c0_i32_1 = arith.constant 0 : i32
    %c0_i32_2 = arith.constant 0 : i32
    return %c0_i32, %c0_i32_0, %c0_i32_1 : i32, i32, i32
  }
  func.func @transform_2(%arg0: i32) -> (i32, i32, i32) {
    %c0_i32 = arith.constant 0 : i32
    %c0_i32_0 = arith.constant 0 : i32
    %c0_i32_1 = arith.constant 0 : i32
    %c0_i32_2 = arith.constant 0 : i32
    return %c0_i32, %c0_i32_0, %c0_i32_1 : i32, i32, i32
  }
  func.func @transform_3(%arg0: i32) -> (i32, i32) {
    %c0_i32 = arith.constant 0 : i32
    %c0_i32_0 = arith.constant 0 : i32
    %c0_i32_1 = arith.constant 0 : i32
    return %c0_i32, %c0_i32_0 : i32, i32
  }
  func.func @transform_4(%arg0: i32) -> (i32, i32) {
    %c0_i32 = arith.constant 0 : i32
    %c0_i32_0 = arith.constant 0 : i32
    %c0_i32_1 = arith.constant 0 : i32
    return %c0_i32, %c0_i32_0 : i32, i32
  }
  func.func @transform_5(%arg0: i32) -> (i32, i32) {
    %c0_i32 = arith.constant 0 : i32
    %c0_i32_0 = arith.constant 0 : i32
    %c0_i32_1 = arith.constant 0 : i32
    return %c0_i32, %c0_i32_0 : i32, i32
  }
  func.func @transform_6(%arg0: i32) -> (i32, i32) {
    %c0_i32 = arith.constant 0 : i32
    %c0_i32_0 = arith.constant 0 : i32
    %c0_i32_1 = arith.constant 0 : i32
    return %c0_i32, %c0_i32_0 : i32, i32
  }
  func.func @transform_7(%arg0: i32) -> (i32, i32) {
    %c0_i32 = arith.constant 0 : i32
    %c0_i32_0 = arith.constant 0 : i32
    return %c0_i32, %arg0 : i32, i32
  }
}

</mosaic_0001>

<bundles_post_ra>
// kernel: tpu_custom_call.1
= control target key start
LH: loop header
LB: loop body
LE: loop exit
PB: predicated region body
PF: predicated region fallthrough
CT: control target
= control target key end

     0   :  { %s3464_s17 = smov 1   ;;  %v4477_v16 = vmov 0.0   ;;  %vm4472_vm0 = vcmask 130048   ;;  %s4464_s0 = inlined_call_operand.vmem [shape: f32[16,512], index: 0, kind: input, shape index: {}]   ;;  %s4465_s1 = inlined_call_operand.vmem [shape: f32[3,16,16], index: 1, kind: input, shape index: {}]   ;;  %s4466_s2 = inlined_call_operand.vmem [shape: f32[3,16,16], index: 2, kind: input, shape index: {}]   ;;  %s4467_s3 = inlined_call_operand.vmem [shape: f32[16,512], index: 3, kind: input, shape index: {}]   ;;  %s4468_s4 = inlined_call_operand.vmem [shape: f32[16,512], index: 4, kind: input, shape index: {}]   ;;  %s4469_s5 = inlined_call_operand.vmem [shape: f32[512,4], index: 5, kind: input, shape index: {}]   ;;  %s4470_s6 = inlined_call_operand.vmem [shape: f32[4,512], index: 6, kind: input, shape index: {}]   ;;  %s4471_s7 = inlined_call_operand.hbm [shape: f32[16,512], index: 7, kind: output, shape index: {}]  }
   0x1   :  { %v29_v0 = vld [vmem:[%s4464_s0 + $0x10] sm:$0xff]  ;;  %v27_v2 = vld [vmem:[%s4464_s0] sm:$0xff]  ;;  %v30_v5 = vld [vmem:[%s4464_s0 + $0x18] sm:$0xff]  ;;  %280 = vmatprep.mubr.f32.mxu0 %v4477_v16  ;;  %357 = vmatprep.mubr.f32.mxu1 %v4477_v16 }
   0x2   :  { %v33_v1 = vld [vmem:[%s4464_s0 + $0x30] sm:$0xff]  ;;  %v31_v4 = vld [vmem:[%s4464_s0 + $0x20] sm:$0xff]  ;;  %v34_v6 = vld [vmem:[%s4464_s0 + $0x38] sm:$0xff] }
   0x3   :  { %v3352_v3 = vpack.i.bf16 %v33_v1, %v29_v0  ;;  %v3342_v7 = vpack.i.bf16 %v31_v4, %v27_v2  ;;  %v28_v8 = vld [vmem:[%s4464_s0 + $0x8] sm:$0xff]  ;;  %v3357_v10 = vpack.i.bf16 %v34_v6, %v30_v5  ;;  %v3006_v12 = vpack.c.bf16 %v33_v1, %v29_v0  ;;  %v2632_v17 = vld [vmem:[%s4465_s1 + $0x10] sm:$0xff] }
   0x4   :  { %v32_v9 = vld [vmem:[%s4464_s0 + $0x28] sm:$0xff]  ;;  %v3004_v14 = vpack.c.bf16 %v34_v6, %v30_v5  ;;  %v3002_v15 = vpack.c.bf16 %v31_v4, %v27_v2 }
   0x5   :  { %3353 = vrot.lane.b32.xlu1 %v3352_v3, %s3464_s17  ;;  %v3000_v11 = vpack.c.bf16 %v32_v9, %v28_v8  ;;  %3343 = vrot.lane.b32.xlu0 %v3342_v7, %s3464_s17  ;;  %v3347_v13 = vpack.i.bf16 %v32_v9, %v28_v8 }
   0x6   :  { %3005 = vmatprep.subr.bf16.mxu1 %v3004_v14 }
   0x7   :  { %3001 = vmatprep.subr.bf16.mxu0 %v3000_v11  ;;  %3007 = vmatpush1.bf16.msra.mxu1 %v3006_v12 }
   0x8   :  { %3003 = vmatpush1.bf16.msra.mxu0 %v3002_v15 }
   0x9   :  { %3358 = vrot.lane.b32.xlu1 %v3357_v10, %s3464_s17  ;;  %3348 = vrot.lane.b32.xlu0 %v3347_v13, %s3464_s17 }
   0xb   :  { %2636 = vmatmul.mubr.msk.f32.vlgmr.msra.gmra.mrb[0].mxu0 %vm4472_vm0, %v2632_v17 }
   0xc   :  { %12 = vsyncpa [#allocation3], 0  ;;  %2638 = vmatmul.mubr.msk.f32.vlgmr.msra.gmra.mrb[0].mxu1 %vm4472_vm0, %v2632_v17  ;;  %286 = vmatprep.mubr.f32.mxu0 %v4477_v16  ;;  %v2633_v18 = vld [vmem:[%s4465_s1 + $0x18] sm:$0xff]  ;;  %s3466_s22 = smov 127   ;;  %v157_v19 = vlaneseq  ;;  %v3565_v23 = vld [vmem:[%s4467_s3 + $0x8] sm:$0xff]  ;;  %s3467_s23 = smov [#allocation2]  }
   0xd   :  { %3368 = vrot.lane.b32.xlu1 %v3347_v13, %s3466_s22  ;;  %363 = vmatprep.mubr.f32.mxu1 %v4477_v16  ;;  %v3570_v24 = vld [vmem:[%s4467_s3] sm:$0xff]  ;;  %v3580_v26 = vld [vmem:[%s4467_s3 + $0x28] sm:$0xff]  ;;  %v3585_v27 = vld [vmem:[%s4467_s3 + $0x18] sm:$0xff]  ;;  %vm4474_vm3 = vcmp.ne.f32.partialorder %v3565_v23, 0.0 }
   0xe   :  { %3363 = vrot.lane.b32.xlu0 %v3342_v7, %s3466_s22  ;;  %v3560_v22 = vand.u32 127, %v157_v19  ;;  %v3575_v25 = vld [vmem:[%s4467_s3 + $0x20] sm:$0xff]  ;;  %v3590_v28 = vld [vmem:[%s4467_s3 + $0x38] sm:$0xff]  ;;  %v3595_v30 = vld [vmem:[%s4467_s3 + $0x10] sm:$0xff]  ;;  %vm48_vm4 = vcmp.ne.f32.partialorder %v3580_v26, 0.0  ;;  %vm46_vm5 = vcmp.ne.f32.partialorder %v3585_v27, 0.0 }
   0xf   :  { %2637 = vmatmul.mubr.msk.f32.gmra.mrb[2].mxu0 %vm4472_vm0, %v2633_v18  ;;  %v3600_v31 = vld [vmem:[%s4467_s3 + $0x30] sm:$0xff]  ;;  %v3605_v32 = vld [vmem:[%s4468_s4] sm:$0xff]  ;;  %v3612_v34 = vld [vmem:[%s4468_s4 + $0x8] sm:$0xff]  ;;  %vm50_vm6 = vcmp.ne.f32.partialorder %v3590_v28, 0.0  ;;  %vm43_vm7 = vcmp.ne.f32.partialorder %v3570_v24, 0.0  ;;  %vm47_vm8 = vcmp.ne.f32.partialorder %v3575_v25, 0.0 }
  0x10   :  { %2639 = vmatmul.mubr.msk.f32.gmra.mrb[2].mxu1 %vm4472_vm0, %v2633_v18  ;;  %440 = vmatprep.mubr.f32.mxu0 %v4477_v16  ;;  %vm159_vm1 = vcmp.lt.s32.totalorder %v3560_v22, 1  ;;  %vm184_vm2 = vcmp.lt.s32.totalorder %v3560_v22, 127  ;;  %v3617_v35 = vld [vmem:[%s4468_s4 + $0x28] sm:$0xff]  ;;  %v3622_v36 = vld [vmem:[%s4468_s4 + $0x18] sm:$0xff]  ;;  %v3638_v38 = vld [vmem:[%s4468_s4 + $0x20] sm:$0xff]  ;;  %vm45_vm9 = vcmp.ne.f32.partialorder %v3595_v30, 0.0 }
  0x11   :  { %3378 = vrot.lane.b32.xlu1 %v3357_v10, %s3466_s22  ;;  %517 = vmatprep.mubr.f32.mxu1 %v4477_v16  ;;  %v3633_v37 = vld [vmem:[%s4468_s4 + $0x38] sm:$0xff]  ;;  %vm4473_vm11 = vcmp.ne.f32.partialorder %v3605_v32, 0.0  ;;  %v3646_v41 = vld [vmem:[%s4468_s4 + $0x10] sm:$0xff]  ;;  %vm64_vm13 = vcmp.ne.f32.partialorder %v3617_v35, 0.0  ;;  %vm62_vm14 = vcmp.ne.f32.partialorder %v3622_v36, 0.0  ;;  %vm63_vm0 = vcmp.ne.f32.partialorder %v3638_v38, 0.0 }
  0x12   :  { %3373 = vrot.lane.b32.xlu0 %v3352_v3, %s3466_s22  ;;  %v3651_v42 = vld [vmem:[%s4468_s4 + $0x30] sm:$0xff]  ;;  %vm4524_vm15 = vcmp.ne.f32.partialorder %v3633_v37, 0.0  ;;  %vm61_vm10 = vcmp.ne.f32.partialorder %v3646_v41, 0.0  ;;  %v1380_v35 = vld [vmem:[%s4466_s2] sm:$0xff]  ;;  %s2621_s3 = sshll.u32 %s3467_s23, 4  ;;  %s2622_s3 = int_to_ptr.vmem [resolvable:$true] %s2621_s3 }
  0x13   :  { %vm4523_vm12 = vcmp.ne.f32.partialorder %v3651_v42, 0.0  ;;  %s3440_s30 = scalar_lea.vmem %s2622_s3, 1024  ;;  %p3445_p1 = scmp.lt.s32.totalorder %s2622_s3, %s2622_s3 }
  0x14   :  { %p3441_p0 = scmp.ne.s32.totalorder %s2622_s3, %s3440_s30  ;;  %p3446_p2 = scmp.lt.s32.totalorder %s3440_s30, %s3440_s30 }
  0x16   :  { %p3447_p3 = por %p3446_p2, %p3445_p1 }
  0x18   :  { %p3448_p4 = pnand %p3447_p3, %p3441_p0 }
  0x77   :  { %v3354_v20 = vpop.permute.xlu1 %3353  ;;  %v3558_v21 = vpop.permute.xlu0 %3343 }
  0x78   :  { %v3356_v43 = vunpack.i.h.bf16 %v3354_v20  ;;  %v3355_v44 = vunpack.i.l.bf16 %v3354_v20  ;;  %v3346_v48 = vunpack.i.h.bf16 %v3558_v21  ;;  %v3345_v49 = vunpack.i.l.bf16 %v3558_v21 }
  0x7b   :  { %v3359_v29 = vpop.permute.xlu1 %3358  ;;  %v3349_v33 = vpop.permute.xlu0 %3348 }
  0x7c   :  { %v3361_v39 = vunpack.i.h.bf16 %v3359_v29  ;;  %v3360_v40 = vunpack.i.l.bf16 %v3359_v29  ;;  %v3351_v45 = vunpack.i.h.bf16 %v3349_v33  ;;  %v3350_v46 = vunpack.i.l.bf16 %v3349_v33 }
  0x7e   :  { %v160_v55 = vsel %vm159_vm1, %v3355_v44, %v3360_v40  ;;  %v161_v56 = vsel %vm159_vm1, %v3356_v43, %v3361_v39  ;;  %v166_v57 = vsel %vm159_vm1, %v3360_v40, %v3345_v49  ;;  %v167_v58 = vsel %vm159_vm1, %v3361_v39, %v3346_v48 }
  0x7f   :  { %v3369_v47 = vpop.permute.xlu1 %3368  ;;  %v163_v59 = vsel %vm159_vm1, %v3351_v45, %v3356_v43  ;;  %v162_v60 = vsel %vm159_vm1, %v3350_v46, %v3355_v44  ;;  %v164_v5 = vsel %vm159_vm1, %v3345_v49, %v3350_v46  ;;  %v165_v6 = vsel %vm159_vm1, %v3346_v48, %v3351_v45 }
  0x80   :  { %v3371_v50 = vunpack.i.h.bf16 %v3369_v47  ;;  %v3370_v51 = vunpack.i.l.bf16 %v3369_v47  ;;  %v3364_v52 = vpop.permute.xlu0 %3363  ;;  %v83_v47 = vld [vmem:[%s4469_s5 + $0x80] sm:$0xff] }
  0x81   :  { %v3366_v53 = vunpack.i.h.bf16 %v3364_v52  ;;  %v3365_v54 = vunpack.i.l.bf16 %v3364_v52  ;;  %v115_v52 = vld [vmem:[%s4469_s5 + $0x180] sm:$0xff] }
  0x83   :  { %v190_v61 = vsel %vm184_vm2, %v3366_v53, %v3371_v50  ;;  %v189_v62 = vsel %vm184_vm2, %v3365_v54, %v3370_v51  ;;  %v3379_v63 = vpop.permute.xlu1 %3378 }
  0x84   :  { %v3381_v0 = vunpack.i.h.bf16 %v3379_v63  ;;  %v3380_v1 = vunpack.i.l.bf16 %v3379_v63  ;;  %v3374_v2 = vpop.permute.xlu0 %3373  ;;  %v193_v3 = vsel %vm43_vm7, %v189_v62, %v166_v57  ;;  %v197_v4 = vsel %vm47_vm8, %v190_v61, %v167_v58 }
  0x85   :  { %v3376_v7 = vunpack.i.h.bf16 %v3374_v2  ;;  %v3375_v8 = vunpack.i.l.bf16 %v3374_v2  ;;  %v3010_v11 = vpack.c.bf16 %v197_v4, %v193_v3  ;;  %v201_v12 = vsel %vm4473_vm11, %v166_v57, %v189_v62  ;;  %v100_v2 = vld [vmem:[%s4469_s5 + $0x108] sm:$0xff]  ;;  %v85_v3 = vld [vmem:[%s4469_s5 + $0x90] sm:$0xff]  ;;  %v86_v4 = vld [vmem:[%s4469_s5 + $0x98] sm:$0xff] }
  0x86   :  { %v191_v9 = vsel %vm184_vm2, %v3380_v1, %v3365_v54  ;;  %v192_v10 = vsel %vm184_vm2, %v3381_v0, %v3366_v53  ;;  %vm4525_vm11 = vcmp.ne.f32.partialorder %v3600_v31, 0.0  ;;  %v116_v53 = vld [vmem:[%s4469_s5 + $0x188] sm:$0xff] }
  0x87   :  { %v186_v13 = vsel %vm184_vm2, %v3376_v7, %v3381_v0  ;;  %v188_v14 = vsel %vm184_vm2, %v3371_v50, %v3376_v7  ;;  %v185_v15 = vsel %vm184_vm2, %v3375_v8, %v3380_v1  ;;  %v187_v17 = vsel %vm184_vm2, %v3370_v51, %v3375_v8  ;;  %v84_v51 = vld [vmem:[%s4469_s5 + $0x88] sm:$0xff]  ;;  %v99_v1 = vld [vmem:[%s4469_s5 + $0x100] sm:$0xff] }
  0x88   :  { %v194_v18 = vsel %vm4474_vm3, %v187_v17, %v164_v5  ;;  %v198_v19 = vsel %vm48_vm4, %v188_v14, %v165_v6  ;;  %v196_v20 = vsel %vm46_vm5, %v191_v9, %v160_v55  ;;  %v200_v21 = vsel %vm50_vm6, %v192_v10, %v161_v56  ;;  %v68_v0 = vld [vmem:[%s4469_s5 + $0x8] sm:$0xff]  ;;  %v2634_v7 = vld [vmem:[%s4465_s1 + $0x20] sm:$0xff] }
  0x89   :  { %v3008_v29 = vpack.c.bf16 %v198_v19, %v194_v18  ;;  %v3012_v33 = vpack.c.bf16 %v200_v21, %v196_v20  ;;  %v195_v39 = vsel %vm45_vm9, %v185_v15, %v162_v60  ;;  %v199_v40 = vsel %vm4525_vm11, %v186_v13, %v163_v59  ;;  %v88_v18 = vld [vmem:[%s4469_s5 + $0xa8] sm:$0xff]  ;;  %v119_v19 = vld [vmem:[%s4469_s5 + $0x1a0] sm:$0xff] }
  0x8a   :  { %v3014_v43 = vpack.c.bf16 %v199_v40, %v195_v39  ;;  %vm4526_vm3 = vcmp.ne.f32.partialorder %v3612_v34, 0.0  ;;  %v206_v45 = vsel %vm64_vm13, %v165_v6, %v188_v14  ;;  %v204_v46 = vsel %vm62_vm14, %v160_v55, %v191_v9  ;;  %v133_v55 = vld [vmem:[%s4465_s1] sm:$0xff]  ;;  %v118_v6 = vld [vmem:[%s4469_s5 + $0x198] sm:$0xff]  ;;  %v101_v14 = vld [vmem:[%s4469_s5 + $0x110] sm:$0xff] }
  0x8b   :  { %v202_v44 = vsel %vm4526_vm3, %v164_v5, %v187_v17  ;;  %3009 = vmatprep.subr.bf16.mxu0 %v3008_v29  ;;  %3013 = vmatprep.subr.bf16.mxu1 %v3012_v33  ;;  %v208_v49 = vsel %vm4524_vm15, %v161_v56, %v192_v10  ;;  %v205_v50 = vsel %vm63_vm0, %v167_v58, %v190_v61  ;;  %vm4527_vm3 = vcmask 130048   ;;  %v117_v5 = vld [vmem:[%s4469_s5 + $0x190] sm:$0xff]  ;;  %v87_v17 = vld [vmem:[%s4469_s5 + $0xa0] sm:$0xff]  ;;  %v120_v20 = vld [vmem:[%s4469_s5 + $0x1a8] sm:$0xff] }
  0x8c   :  { %v3016_v48 = vpack.c.bf16 %v206_v45, %v202_v44  ;;  %3011 = vmatpush1.bf16.msra.mxu0 %v3010_v11  ;;  %3015 = vmatpush1.bf16.msra.mxu1 %v3014_v43  ;;  %v3020_v54 = vpack.c.bf16 %v208_v49, %v204_v46  ;;  %v203_v56 = vsel %vm61_vm10, %v162_v60, %v185_v15  ;;  %vm4528_vm11 = vmmov %vm4527_vm3  ;;  %v134_v60 = vld [vmem:[%s4465_s1 + $0x8] sm:$0xff]  ;;  %v69_v10 = vld [vmem:[%s4469_s5 + $0x10] sm:$0xff] }
  0x8d   :  { %v207_v57 = vsel %vm4523_vm12, %v163_v59, %v186_v13  ;;  %v3018_v58 = vpack.c.bf16 %v205_v50, %v201_v12  ;;  %v3741_v62 = vpack.c.bf16 %v84_v51, %v83_v47  ;;  %v3743_v63 = vpack.c.bf16 %v116_v53, %v115_v52  ;;  %v67_v59 = vld [vmem:[%s4469_s5] sm:$0xff]  ;;  %v70_v11 = vld [vmem:[%s4469_s5 + $0x18] sm:$0xff]  ;;  %v2635_v21 = vld [vmem:[%s4465_s1 + $0x28] sm:$0xff] }
  0x8e   :  { %3017 = vmatprep.subr.bf16.mxu0 %v3016_v48  ;;  %3021 = vmatprep.subr.bf16.mxu1 %v3020_v54  ;;  %v3022_v61 = vpack.c.bf16 %v207_v57, %v203_v56  ;;  %v3785_v8 = vpack.c.bf16 %v68_v0, %v67_v59  ;;  %v3787_v9 = vpack.c.bf16 %v100_v2, %v99_v1  ;;  %v102_v15 = vld [vmem:[%s4469_s5 + $0x118] sm:$0xff]  ;;  %v71_v39 = vld [vmem:[%s4469_s5 + $0x20] sm:$0xff]  ;;  %v72_v40 = vld [vmem:[%s4469_s5 + $0x28] sm:$0xff] }
  0x8f   :  { %2640 = vmatmul.mubr.msk.f32.vlgmr.msra.gmra.mrb[0].mxu0 %vm4527_vm3, %v133_v55  ;;  %2642 = vmatmul.mubr.msk.f32.vlgmr.msra.gmra.mrb[0].mxu1 %vm4528_vm11, %v133_v55  ;;  %vm4529_vm11 = vmmov %vm4527_vm3  ;;  %v3795_v12 = vpack.c.bf16 %v86_v4, %v85_v3  ;;  %v3797_v13 = vpack.c.bf16 %v118_v6, %v117_v5  ;;  %v3826_v29 = vpack.c.bf16 %v70_v11, %v69_v10  ;;  %v103_v45 = vld [vmem:[%s4469_s5 + $0x120] sm:$0xff]  ;;  %v104_v46 = vld [vmem:[%s4469_s5 + $0x128] sm:$0xff] }
  0x90   :  { %3019 = vmatpush1.bf16.msra.mxu0 %v3018_v58  ;;  %3023 = vmatpush1.bf16.msra.mxu1 %v3022_v61  ;;  %v3828_v33 = vpack.c.bf16 %v102_v15, %v101_v14  ;;  %v3838_v43 = vpack.c.bf16 %v88_v18, %v87_v17  ;;  %v3840_v44 = vpack.c.bf16 %v120_v20, %v119_v19  ;;  %v89_v47 = vld [vmem:[%s4469_s5 + $0xb0] sm:$0xff]  ;;  %v90_v48 = vld [vmem:[%s4469_s5 + $0xb8] sm:$0xff]  ;;  %v91_v61 = vld [vmem:[%s4469_s5 + $0xc0] sm:$0xff] }
  0x91   :  { %446 = vmatprep.mubr.f32.mxu0 %v4477_v16  ;;  %523 = vmatprep.mubr.f32.mxu1 %v4477_v16  ;;  %v121_v49 = vld [vmem:[%s4469_s5 + $0x1b0] sm:$0xff]  ;;  %v122_v50 = vld [vmem:[%s4469_s5 + $0x1b8] sm:$0xff]  ;;  %v3864_v51 = vpack.c.bf16 %v72_v40, %v71_v39  ;;  %v3866_v52 = vpack.c.bf16 %v104_v46, %v103_v45  ;;  %v3876_v55 = vpack.c.bf16 %v90_v48, %v89_v47  ;;  %v123_v59 = vld [vmem:[%s4469_s5 + $0x1c0] sm:$0xff] }
  0x92   :  { %3025 = vmatprep.subr.bf16.mxu0 %v3741_v62  ;;  %3057 = vmatprep.subr.bf16.mxu1 %v3743_v63  ;;  %v73_v53 = vld [vmem:[%s4469_s5 + $0x30] sm:$0xff]  ;;  %v74_v54 = vld [vmem:[%s4469_s5 + $0x38] sm:$0xff]  ;;  %v3878_v56 = vpack.c.bf16 %v122_v50, %v121_v49  ;;  %v124_v0 = vld [vmem:[%s4469_s5 + $0x1c8] sm:$0xff] }
  0x93   :  { %2641 = vmatmul.mubr.msk.f32.gmra.mrb[2].mxu0 %vm4527_vm3, %v134_v60  ;;  %2643 = vmatmul.mubr.msk.f32.gmra.mrb[2].mxu1 %vm4529_vm11, %v134_v60  ;;  %vm4530_vm11 = vmmov %vm4527_vm3  ;;  %4532 = vst [vmem:[#allocation5_spill] sm:$0xff] %v3876_v55  ;;  %v105_v57 = vld [vmem:[%s4469_s5 + $0x130] sm:$0xff]  ;;  %v106_v58 = vld [vmem:[%s4469_s5 + $0x138] sm:$0xff]  ;;  %v3900_v1 = vpack.c.bf16 %v74_v54, %v73_v53  ;;  %v3914_v6 = vpack.c.bf16 %v124_v0, %v123_v59 }
  0x94   :  { %600 = vmatprep.mubr.f32.mxu0 %v4477_v16  ;;  %677 = vmatprep.mubr.f32.mxu1 %v4477_v16  ;;  %4533 = vst [vmem:[#allocation6_spill] sm:$0xff] %v3878_v56  ;;  %v92_v60 = vld [vmem:[%s4469_s5 + $0xc8] sm:$0xff]  ;;  %v3902_v2 = vpack.c.bf16 %v106_v58, %v105_v57  ;;  %v75_v3 = vld [vmem:[%s4469_s5 + $0x40] sm:$0xff]  ;;  %v93_v11 = vld [vmem:[%s4469_s5 + $0xd0] sm:$0xff] }
  0x95   :  { %4534 = vst [vmem:[#allocation7_spill] sm:$0xff] %v3900_v1  ;;  %v76_v4 = vld [vmem:[%s4469_s5 + $0x48] sm:$0xff]  ;;  %v3912_v5 = vpack.c.bf16 %v92_v60, %v91_v61  ;;  %4537 = vst [vmem:[#allocation10_spill] sm:$0xff] %v3914_v6  ;;  %v94_v14 = vld [vmem:[%s4469_s5 + $0xd8] sm:$0xff] }
  0x96   :  { %4535 = vst [vmem:[#allocation8_spill] sm:$0xff] %v3902_v2  ;;  %v108_v10 = vld [vmem:[%s4469_s5 + $0x148] sm:$0xff]  ;;  %v125_v15 = vld [vmem:[%s4469_s5 + $0x1d0] sm:$0xff]  ;;  %v126_v17 = vld [vmem:[%s4469_s5 + $0x1d8] sm:$0xff]  ;;  %v3936_v18 = vpack.c.bf16 %v76_v4, %v75_v3  ;;  %v3948_v39 = vpack.c.bf16 %v94_v14, %v93_v11 }
  0x97   :  { %2644 = vmatmul.mubr.msk.f32.vlgmr.msra.gmra.mrb[0].mxu0 %vm4527_vm3, %v2634_v7  ;;  %2646 = vmatmul.mubr.msk.f32.vlgmr.msra.gmra.mrb[0].mxu1 %vm4530_vm11, %v2634_v7  ;;  %vm4531_vm11 = vmmov %vm4527_vm3  ;;  %4536 = vst [vmem:[#allocation9_spill] sm:$0xff] %v3912_v5  ;;  %v107_v7 = vld [vmem:[%s4469_s5 + $0x140] sm:$0xff]  ;;  %v77_v20 = vld [vmem:[%s4469_s5 + $0x50] sm:$0xff]  ;;  %v3950_v40 = vpack.c.bf16 %v126_v17, %v125_v15 }
  0x98   :  { %606 = vmatprep.mubr.f32.mxu0 %v4477_v16  ;;  %683 = vmatprep.mubr.f32.mxu1 %v4477_v16  ;;  %4538 = vst [vmem:[#allocation11_spill] sm:$0xff] %v3936_v18  ;;  %v3938_v19 = vpack.c.bf16 %v108_v10, %v107_v7  ;;  %4540 = vst [vmem:[#allocation13_spill] sm:$0xff] %v3948_v39  ;;  %v109_v45 = vld [vmem:[%s4469_s5 + $0x150] sm:$0xff]  ;;  %v110_v46 = vld [vmem:[%s4469_s5 + $0x158] sm:$0xff] }
  0x99   :  { %3027 = vmatpush3.bf16.msra.mxu0 %v3785_v8  ;;  %3059 = vmatpush3.bf16.msra.mxu1 %v3787_v9  ;;  %4541 = vst [vmem:[#allocation14_spill] sm:$0xff] %v3950_v40  ;;  %v95_v47 = vld [vmem:[%s4469_s5 + $0xe0] sm:$0xff]  ;;  %v96_v48 = vld [vmem:[%s4469_s5 + $0xe8] sm:$0xff]  ;;  %v3974_v54 = vpack.c.bf16 %v110_v46, %v109_v45  ;;  %v97_v3 = vld [vmem:[%s4469_s5 + $0xf0] sm:$0xff] }
  0x9a   :  { %3029 = vmatprep.subr.bf16.mxu0 %v3795_v12  ;;  %3061 = vmatprep.subr.bf16.mxu1 %v3797_v13  ;;  %4539 = vst [vmem:[#allocation12_spill] sm:$0xff] %v3938_v19  ;;  %v127_v49 = vld [vmem:[%s4469_s5 + $0x1e0] sm:$0xff]  ;;  %v128_v50 = vld [vmem:[%s4469_s5 + $0x1e8] sm:$0xff]  ;;  %v3984_v61 = vpack.c.bf16 %v96_v48, %v95_v47  ;;  %v98_v4 = vld [vmem:[%s4469_s5 + $0xf8] sm:$0xff] }
  0x9b   :  { %2645 = vmatmul.mubr.msk.f32.gmra.mrb[2].mxu0 %vm4527_vm3, %v2635_v21  ;;  %2647 = vmatmul.mubr.msk.f32.gmra.mrb[2].mxu1 %vm4531_vm11, %v2635_v21  ;;  %v78_v21 = vld [vmem:[%s4469_s5 + $0x58] sm:$0xff]  ;;  %4543 = vst [vmem:[#allocation16_spill] sm:$0xff] %v3974_v54  ;;  %v79_v57 = vld [vmem:[%s4469_s5 + $0x60] sm:$0xff]  ;;  %v80_v58 = vld [vmem:[%s4469_s5 + $0x68] sm:$0xff]  ;;  %v3986_v60 = vpack.c.bf16 %v128_v50, %v127_v49  ;;  %v4017_v17 = vpack.c.bf16 %v98_v4, %v97_v3  ;;  %vm4522_vm3 = vcmask 1043456   ;;  %vm4521_vm11 = vcmask 31744  }
  0x9c   :  { %v3972_v53 = vpack.c.bf16 %v78_v21, %v77_v20  ;;  %4544 = vst [vmem:[#allocation17_spill] sm:$0xff] %v3984_v61  ;;  %v111_v59 = vld [vmem:[%s4469_s5 + $0x160] sm:$0xff]  ;;  %v112_v0 = vld [vmem:[%s4469_s5 + $0x168] sm:$0xff]  ;;  %v129_v7 = vld [vmem:[%s4469_s5 + $0x1f0] sm:$0xff]  ;;  %v4008_v11 = vpack.c.bf16 %v80_v58, %v79_v57 }
  0x9d   :  { %3031 = vmatpush3.bf16.msra.mxu0 %v3826_v29  ;;  %3063 = vmatpush3.bf16.msra.mxu1 %v3828_v33  ;;  %4545 = vst [vmem:[#allocation18_spill] sm:$0xff] %v3986_v60  ;;  %v130_v10 = vld [vmem:[%s4469_s5 + $0x1f8] sm:$0xff]  ;;  %v4010_v14 = vpack.c.bf16 %v112_v0, %v111_v59  ;;  %v81_v15 = vld [vmem:[%s4469_s5 + $0x70] sm:$0xff]  ;;  %4548 = vst [vmem:[#allocation21_spill] sm:$0xff] %v4017_v17 }
  0x9e   :  { %3033 = vmatprep.subr.bf16.mxu0 %v3838_v43  ;;  %3065 = vmatprep.subr.bf16.mxu1 %v3840_v44  ;;  %4542 = vst [vmem:[#allocation15_spill] sm:$0xff] %v3972_v53  ;;  %4546 = vst [vmem:[#allocation19_spill] sm:$0xff] %v4008_v11  ;;  %v4019_v20 = vpack.c.bf16 %v130_v10, %v129_v7  ;;  %v82_v21 = vld [vmem:[%s4469_s5 + $0x78] sm:$0xff]  ;;  %v113_v45 = vld [vmem:[%s4469_s5 + $0x170] sm:$0xff] }
  0x9f   :  { %4547 = vst [vmem:[#allocation20_spill] sm:$0xff] %v4010_v14  ;;  %v114_v46 = vld [vmem:[%s4469_s5 + $0x178] sm:$0xff]  ;;  %v4032_v47 = vpack.c.bf16 %v82_v21, %v81_v15 }
  0xa0   :  { %4549 = vst [vmem:[#allocation22_spill] sm:$0xff] %v4019_v20  ;;  %v4034_v48 = vpack.c.bf16 %v114_v46, %v113_v45 }
  0xa1   :  { %3035 = vmatpush3.bf16.msra.mxu0 %v3864_v51  ;;  %3067 = vmatpush3.bf16.msra.mxu1 %v3866_v52  ;;  %4550 = vst [vmem:[#allocation23_spill] sm:$0xff] %v4032_v47 }
  0xa2   :  { %3037 = vmatprep.subr.bf16.mxu0 %v3876_v55  ;;  %3069 = vmatprep.subr.bf16.mxu1 %v3878_v56  ;;  %4551 = vst [vmem:[#allocation24_spill] sm:$0xff] %v4034_v48 }
  0xa5   :  { %3039 = vmatpush3.bf16.msra.mxu0 %v3900_v1  ;;  %3071 = vmatpush3.bf16.msra.mxu1 %v3902_v2 }
  0xa6   :  { %3041 = vmatprep.subr.bf16.mxu0 %v3912_v5  ;;  %3073 = vmatprep.subr.bf16.mxu1 %v3914_v6 }
  0xa9   :  { %3043 = vmatpush3.bf16.msra.mxu0 %v3936_v18  ;;  %3075 = vmatpush3.bf16.msra.mxu1 %v3938_v19 }
  0xaa   :  { %3045 = vmatprep.subr.bf16.mxu0 %v3948_v39  ;;  %3077 = vmatprep.subr.bf16.mxu1 %v3950_v40 }
  0xad   :  { %3047 = vmatpush3.bf16.msra.mxu0 %v3972_v53  ;;  %3079 = vmatpush3.bf16.msra.mxu1 %v3974_v54 }
  0xae   :  { %3049 = vmatprep.subr.bf16.mxu0 %v3984_v61  ;;  %3081 = vmatprep.subr.bf16.mxu1 %v3986_v60 }
  0xb1   :  { %3051 = vmatpush3.bf16.msra.mxu0 %v4008_v11  ;;  %3083 = vmatpush3.bf16.msra.mxu1 %v4010_v14 }
  0xb2   :  { %3053 = vmatprep.subr.bf16.mxu0 %v4017_v17  ;;  %3085 = vmatprep.subr.bf16.mxu1 %v4019_v20 }
  0xb5   :  { %3055 = vmatpush3.bf16.msra.mxu0 %v4032_v47  ;;  %3087 = vmatpush3.bf16.msra.mxu1 %v4034_v48 }
  0xb6   :  { %3089 = vmatprep.subr.bf16.mxu0 %v3741_v62  ;;  %3121 = vmatprep.subr.bf16.mxu1 %v3743_v63 }
 0x16a   :  { %v4042_v49 = vpop.f32.mrb[0].mxu0  ;;  %v4044_v50 = vpop.f32.mrb[0].mxu1 }
 0x16b   :  { %v4046_v57 = vpop.f32.mrb[1].mxu0  ;;  %v4048_v58 = vpop.f32.mrb[1].mxu1  ;;  %v848_v15 = vmul.f32 %v4042_v49, %v4042_v49  ;;  %v850_v21 = vmul.f32 %v4044_v50, %v4044_v50 }
 0x16c   :  { %762 = vmatprep.mubr.f32.mxu0 %v4046_v57  ;;  %837 = vmatprep.mubr.f32.mxu1 %v4048_v58  ;;  %v849_v7 = vmul.f32 %v4046_v57, %v4046_v57  ;;  %v851_v10 = vmul.f32 %v4048_v58, %v4048_v58 }
 0x16d   :  { %763 = vmatmul.mubr.f32.vlgmr.msra.gmra.mrb[4].mxu0 %v4042_v49  ;;  %838 = vmatmul.mubr.f32.vlgmr.msra.gmra.mrb[4].mxu1 %v4044_v50 }
 0x16e   :  { %3091 = vmatpush3.bf16.msra.mxu0 %v3785_v8  ;;  %3123 = vmatpush3.bf16.msra.mxu1 %v3787_v9  ;;  %v4056_v59 = vpop.f32.mrb[2].mxu0  ;;  %v4058_v0 = vpop.f32.mrb[2].mxu1 }
 0x16f   :  { %v4060_v3 = vpop.f32.mrb[3].mxu0  ;;  %v4062_v4 = vpop.f32.mrb[3].mxu1  ;;  %3093 = vmatprep.subr.bf16.mxu0 %v3795_v12  ;;  %3125 = vmatprep.subr.bf16.mxu1 %v3797_v13 }
 0x170   :  { %767 = vmatprep.mubr.f32.mxu0 %v4060_v3  ;;  %842 = vmatprep.mubr.f32.mxu1 %v4062_v4  ;;  %v853_v45 = vmul.f32 %v4060_v3, %v4060_v3  ;;  %v855_v46 = vmul.f32 %v4062_v4, %v4062_v4 }
 0x171   :  { %768 = vmatmul.mubr.f32.gmra.mrb[6].mxu0 %v4056_v59  ;;  %843 = vmatmul.mubr.f32.gmra.mrb[6].mxu1 %v4058_v0 }
 0x172   :  { %3095 = vmatpush3.bf16.msra.mxu0 %v3826_v29  ;;  %3127 = vmatpush3.bf16.msra.mxu1 %v3828_v33 }
 0x173   :  { %920 = vmatprep.mubr.f32.mxu0 %v849_v7  ;;  %995 = vmatprep.mubr.f32.mxu1 %v851_v10  ;;  %v852_v7 = vmul.f32 %v4056_v59, %v4056_v59  ;;  %v854_v10 = vmul.f32 %v4058_v0, %v4058_v0 }
 0x174   :  { %3097 = vmatprep.subr.bf16.mxu0 %v3838_v43  ;;  %3129 = vmatprep.subr.bf16.mxu1 %v3840_v44 }
 0x176   :  { %3099 = vmatpush3.bf16.msra.mxu0 %v3864_v51  ;;  %3131 = vmatpush3.bf16.msra.mxu1 %v3866_v52 }
 0x177   :  { %3101 = vmatprep.subr.bf16.mxu0 %v3876_v55  ;;  %3133 = vmatprep.subr.bf16.mxu1 %v3878_v56 }
 0x17a   :  { %3103 = vmatpush3.bf16.msra.mxu0 %v3900_v1  ;;  %3135 = vmatpush3.bf16.msra.mxu1 %v3902_v2 }
 0x17b   :  { %3105 = vmatprep.subr.bf16.mxu0 %v3912_v5  ;;  %3137 = vmatprep.subr.bf16.mxu1 %v3914_v6 }
 0x17e   :  { %3107 = vmatpush3.bf16.msra.mxu0 %v3936_v18  ;;  %3139 = vmatpush3.bf16.msra.mxu1 %v3938_v19 }
 0x17f   :  { %3109 = vmatprep.subr.bf16.mxu0 %v3948_v39  ;;  %3141 = vmatprep.subr.bf16.mxu1 %v3950_v40 }
 0x182   :  { %3111 = vmatpush3.bf16.msra.mxu0 %v3972_v53  ;;  %3143 = vmatpush3.bf16.msra.mxu1 %v3974_v54 }
 0x183   :  { %3113 = vmatprep.subr.bf16.mxu0 %v3984_v61  ;;  %3145 = vmatprep.subr.bf16.mxu1 %v3986_v60 }
 0x186   :  { %3115 = vmatpush3.bf16.msra.mxu0 %v4008_v11  ;;  %3147 = vmatpush3.bf16.msra.mxu1 %v4010_v14 }
 0x187   :  { %3117 = vmatprep.subr.bf16.mxu0 %v4017_v17  ;;  %3149 = vmatprep.subr.bf16.mxu1 %v4019_v20 }
 0x18a   :  { %3119 = vmatpush3.bf16.msra.mxu0 %v4032_v47  ;;  %3151 = vmatpush3.bf16.msra.mxu1 %v4034_v48  ;;  %v4117_v48 = vld [vmem:[%s4470_s6] sm:$0xff] }
 0x18d   :  { %921 = vmatmul.mubr.f32.vlgmr.msra.gmra.mrb[8].mxu0 %v848_v15  ;;  %996 = vmatmul.mubr.f32.vlgmr.msra.gmra.mrb[8].mxu1 %v850_v21  ;;  %v4122_v15 = vld [vmem:[%s4470_s6 + $0x8] sm:$0xff]  ;;  %v4126_v21 = vcombine.high %v4117_v48, %v4117_v48 }
 0x18e   :  { %925 = vmatprep.mubr.f32.mxu0 %v853_v45  ;;  %1000 = vmatprep.mubr.f32.mxu1 %v855_v46  ;;  %v4130_v45 = vcombine.high %v4122_v15, %v4122_v15 }
 0x18f   :  { %4552 = vst [vmem:[#allocation25_spill] sm:$0xff] %v4126_v21  ;;  %2648 = vmatprep.subr.msk.mxu0 %vm4522_vm3, %v4126_v21 }
 0x190   :  { %4553 = vst [vmem:[#allocation26_spill] sm:$0xff] %v4130_v45  ;;  %2652 = vmatprep.subr.msk.mxu1 %vm4522_vm3, %v4130_v45  ;;  %2649 = vmatpush1.msk.msra.mxu0 %vm4522_vm3, %v4117_v48 }
 0x191   :  { %926 = vmatmul.mubr.f32.gmra.mrb[10].mxu0 %v852_v7  ;;  %1001 = vmatmul.mubr.f32.gmra.mrb[10].mxu1 %v854_v10 }
 0x192   :  { %1104 = vmatprep.mubr.f32.mxu0 %v4477_v16  ;;  %1181 = vmatprep.mubr.f32.mxu1 %v4477_v16 }
 0x193   :  { %2653 = vmatpush1.msk.msra.mxu1 %vm4522_vm3, %v4122_v15  ;;  %2656 = vmatprep.subr.msk.mxu0 %vm4522_vm3, %v4126_v21 }
 0x194   :  { %2660 = vmatprep.subr.msk.mxu1 %vm4522_vm3, %v4130_v45 }
 0x240   :  { %v2728_v46 = vpop.f32.mrb[4].mxu0  ;;  %v2766_v7 = vpop.f32.mrb[4].mxu1 }
 0x241   :  { %v2729_v10 = vpop.f32.mrb[5].mxu0  ;;  %v2767_v16 = vpop.f32.mrb[5].mxu1 }
 0x242   :  { %v2730_v47 = vadd.f32 %v2729_v10, %v2728_v46  ;;  %v2768_v20 = vadd.f32 %v2767_v16, %v2766_v7 }
 0x244   :  { %v840_v17 = vadd.f32 %v2768_v20, %v2730_v47  ;;  %v2731_v14 = vpop.f32.mrb[6].mxu0  ;;  %v2769_v11 = vpop.f32.mrb[6].mxu1 }
 0x245   :  { %v2732_v60 = vpop.f32.mrb[7].mxu0  ;;  %v2770_v61 = vpop.f32.mrb[7].mxu1 }
 0x246   :  { %v2733_v54 = vadd.f32 %v2732_v60, %v2731_v14  ;;  %v2771_v53 = vadd.f32 %v2770_v61, %v2769_v11  ;;  %v1006_v21 = vmul.f32 0.0078125, %v840_v17 }
 0x248   :  { %v845_v40 = vadd.f32 %v2771_v53, %v2733_v54  ;;  %v1010_v46 = vmul.f32 %v1006_v21, %v1006_v21 }
 0x24a   :  { %v1007_v47 = vmul.f32 0.0078125, %v845_v40 }
 0x24c   :  { %v1011_v53 = vmul.f32 %v1007_v47, %v1007_v47 }
 0x260   :  { %v2804_v39 = vpop.f32.mrb[8].mxu0  ;;  %v2842_v19 = vpop.f32.mrb[8].mxu1 }
 0x261   :  { %v2805_v18 = vpop.f32.mrb[9].mxu0  ;;  %v2843_v6 = vpop.f32.mrb[9].mxu1 }
 0x262   :  { %v2806_v45 = vadd.f32 %v2805_v18, %v2804_v39  ;;  %v2844_v5 = vadd.f32 %v2843_v6, %v2842_v19 }
 0x264   :  { %v998_v2 = vadd.f32 %v2844_v5, %v2806_v45  ;;  %v2807_v1 = vpop.f32.mrb[10].mxu0  ;;  %v2845_v56 = vpop.f32.mrb[10].mxu1 }
 0x265   :  { %v2808_v16 = vpop.f32.mrb[11].mxu0  ;;  %v2846_v20 = vpop.f32.mrb[11].mxu1 }
 0x266   :  { %v1008_v7 = vmul.f32 0.0078125, %v998_v2  ;;  %v2809_v10 = vadd.f32 %v2808_v16, %v2807_v1  ;;  %v2847_v55 = vadd.f32 %v2846_v20, %v2845_v56  ;;  %v4554_v1 = vmov 0.0  }
 0x268   :  { %v1012_v60 = vsub.f32 %v1008_v7, %v1010_v46  ;;  %v1003_v61 = vadd.f32 %v2847_v55, %v2809_v10 }
 0x26a   :  { %v1014_v54 = vmax.f32 %v1012_v60, 0.0  ;;  %v1009_v11 = vmul.f32 0.0078125, %v1003_v61 }
 0x26c   :  { %v1016_v14 = vadd.f32 1e-05, %v1014_v54  ;;  %v1013_v17 = vsub.f32 %v1009_v11, %v1011_v53 }
 0x26e   :  { %3424 = vrsqrt.f32 %v1016_v14  ;;  %v1015_v18 = vmax.f32 %v1013_v17, 0.0 }
 0x270   :  { %v1017_v6 = vadd.f32 1e-05, %v1015_v18 }
 0x272   :  { %3426 = vrsqrt.f32 %v1017_v6 }
 0x278   :  { %v3425_v5 = vpop.eup %3424 }
 0x279   :  { %2650 = vmatmul.mubr.msk.f32.vlgmr.msra.gmra.mrb[12].mxu0 %vm4521_vm11, %v3425_v5  ;;  %2654 = vmatmul.mubr.msk.f32.vlgmr.msra.gmra.mrb[12].mxu1 %vm4521_vm11, %v3425_v5  ;;  %v1194_v2 = vmul.f32 %v3425_v5, %v1006_v21 }
 0x27a   :  { %1110 = vmatprep.mubr.f32.mxu0 %v4554_v1  ;;  %1187 = vmatprep.mubr.f32.mxu1 %v4554_v1 }
 0x27b   :  { %2657 = vmatpush1.msk.msra.mxu0 %vm4522_vm3, %v4117_v48  ;;  %2661 = vmatpush1.msk.msra.mxu1 %vm4522_vm3, %v4122_v15 }
 0x27c   :  { %v3427_v55 = vpop.eup %3426 }
 0x27d   :  { %2651 = vmatmul.mubr.msk.f32.gmra.mrb[14].mxu0 %vm4521_vm11, %v3427_v55  ;;  %2655 = vmatmul.mubr.msk.f32.gmra.mrb[14].mxu1 %vm4521_vm11, %v3427_v55  ;;  %v1195_v56 = vmul.f32 %v3427_v55, %v1007_v47 }
 0x27e   :  { %1266 = vmatprep.mubr.f32.mxu0 %v4554_v1  ;;  %1343 = vmatprep.mubr.f32.mxu1 %v4554_v1 }
 0x281   :  { %2658 = vmatmul.mubr.msk.f32.vlgmr.msra.gmra.mrb[16].mxu0 %vm4521_vm11, %v1194_v2  ;;  %2662 = vmatmul.mubr.msk.f32.vlgmr.msra.gmra.mrb[16].mxu1 %vm4521_vm11, %v1194_v2 }
 0x282   :  { %1272 = vmatprep.mubr.f32.mxu0 %v4554_v1  ;;  %1349 = vmatprep.mubr.f32.mxu1 %v4554_v1 }
 0x285   :  { %2659 = vmatmul.mubr.msk.f32.gmra.mrb[18].mxu0 %vm4521_vm11, %v1195_v56  ;;  %2663 = vmatmul.mubr.msk.f32.gmra.mrb[18].mxu1 %vm4521_vm11, %v1195_v56  ;;  %vm4555_vm11 = vcmask 130048  }
 0x286   :  { %1522 = vmatprep.mubr.f32.mxu0 %v4554_v1  ;;  %1599 = vmatprep.mubr.f32.mxu1 %v4554_v1  ;;  %vm4556_vm3 = vmmov %vm4555_vm11 }
 0x287   :  { %vm4557_vm12 = vmmov %vm4556_vm3 }
 0x288   :  { %vm4558_vm15 = vmmov %vm4556_vm3 }
 0x34c   :  { %v1106_v19 = vpop.f32.mrb[12].mxu0  ;;  %v1183_v39 = vpop.f32.mrb[12].mxu1 }
 0x34d   :  { %v1356_v40 = vmul.f32 %v1106_v19, %v4042_v49  ;;  %v1358_v21 = vmul.f32 %v1183_v39, %v4044_v50  ;;  %v1108_v45 = vpop.f32.mrb[13].mxu0  ;;  %v1185_v46 = vpop.f32.mrb[13].mxu1 }
 0x34e   :  { %v1357_v16 = vmul.f32 %v1108_v45, %v4046_v57  ;;  %v1359_v20 = vmul.f32 %v1185_v46, %v4048_v58 }
 0x350   :  { %v1112_v47 = vpop.f32.mrb[14].mxu0  ;;  %v1189_v7 = vpop.f32.mrb[14].mxu1 }
 0x351   :  { %v1360_v10 = vmul.f32 %v1112_v47, %v4056_v59  ;;  %v1362_v60 = vmul.f32 %v1189_v7, %v4058_v0  ;;  %v1114_v61 = vpop.f32.mrb[15].mxu0  ;;  %v1191_v53 = vpop.f32.mrb[15].mxu1 }
 0x352   :  { %v1361_v54 = vmul.f32 %v1114_v61, %v4060_v3  ;;  %v1363_v49 = vmul.f32 %v1191_v53, %v4062_v4 }
 0x354   :  { %v1268_v11 = vpop.f32.mrb[16].mxu0  ;;  %v1345_v50 = vpop.f32.mrb[16].mxu1 }
 0x355   :  { %v1364_v14 = vsub.f32 %v1356_v40, %v1268_v11  ;;  %v1366_v17 = vsub.f32 %v1358_v21, %v1345_v50  ;;  %v1270_v18 = vpop.f32.mrb[17].mxu0  ;;  %v1347_v57 = vpop.f32.mrb[17].mxu1 }
 0x356   :  { %v1365_v6 = vsub.f32 %v1357_v16, %v1270_v18  ;;  %v1367_v58 = vsub.f32 %v1359_v20, %v1347_v57 }
 0x357   :  { %v1372_v45 = vmax.f32 %v1364_v14, 0.0  ;;  %v1374_v3 = vmax.f32 %v1366_v17, 0.0 }
 0x358   :  { %v1274_v5 = vpop.f32.mrb[18].mxu0  ;;  %v1351_v2 = vpop.f32.mrb[18].mxu1  ;;  %v1373_v47 = vmax.f32 %v1365_v6, 0.0  ;;  %v1375_v7 = vmax.f32 %v1367_v58, 0.0 }
 0x359   :  { %v1368_v55 = vsub.f32 %v1360_v10, %v1274_v5  ;;  %v1370_v59 = vsub.f32 %v1362_v60, %v1351_v2  ;;  %v1276_v56 = vpop.f32.mrb[19].mxu0  ;;  %v1353_v0 = vpop.f32.mrb[19].mxu1 }
 0x35a   :  { %v1369_v19 = vsub.f32 %v1361_v54, %v1276_v56  ;;  %v1371_v39 = vsub.f32 %v1363_v49, %v1353_v0  ;;  %v2664_v54 = vld [vmem:[%s4466_s2 + $0x10] sm:$0xff]  ;;  %v2665_v49 = vld [vmem:[%s4466_s2 + $0x18] sm:$0xff] }
 0x35b   :  { %v1376_v46 = vmax.f32 %v1368_v55, 0.0  ;;  %v1378_v4 = vmax.f32 %v1370_v59, 0.0 }
 0x35c   :  { %v1377_v40 = vmax.f32 %v1369_v19, 0.0  ;;  %v1379_v21 = vmax.f32 %v1371_v39, 0.0 }
 0x35d   :  { %v3154_v61 = vpack.c.bf16 %v1376_v46, %v1372_v45  ;;  %v3158_v53 = vpack.c.bf16 %v1378_v4, %v1374_v3  ;;  %v3382_v16 = vpack.i.bf16 %v1376_v46, %v1372_v45  ;;  %v3387_v20 = vpack.i.bf16 %v1378_v4, %v1374_v3 }
 0x35e   :  { %v3156_v11 = vpack.c.bf16 %v1379_v21, %v1375_v7  ;;  %v3397_v50 = vpack.i.bf16 %v1377_v40, %v1373_v47  ;;  %v3152_v10 = vpack.c.bf16 %v1377_v40, %v1373_v47  ;;  %v3402_v60 = vpack.i.bf16 %v1379_v21, %v1375_v7 }
 0x35f   :  { %3383 = vrot.lane.b32.xlu0 %v3382_v16, %s3464_s17 }
 0x360   :  { %3157 = vmatprep.subr.bf16.mxu1 %v3156_v11  ;;  %3398 = vrot.lane.b32.xlu1 %v3397_v50, %s3464_s17 }
 0x361   :  { %3153 = vmatprep.subr.bf16.mxu0 %v3152_v10  ;;  %3159 = vmatpush1.bf16.msra.mxu1 %v3158_v53 }
 0x362   :  { %3155 = vmatpush1.bf16.msra.mxu0 %v3154_v61 }
 0x363   :  { %3388 = vrot.lane.b32.xlu0 %v3387_v20, %s3464_s17 }
 0x364   :  { %3403 = vrot.lane.b32.xlu1 %v3402_v60, %s3464_s17  ;;  %2670 = vmatmul.mubr.msk.f32.vlgmr.msra.gmra.mrb[20].mxu1 %vm4555_vm11, %v2664_v54 }
 0x365   :  { %2668 = vmatmul.mubr.msk.f32.vlgmr.msra.gmra.mrb[20].mxu0 %vm4556_vm3, %v2664_v54  ;;  %1605 = vmatprep.mubr.f32.mxu1 %v4554_v1 }
 0x366   :  { %1528 = vmatprep.mubr.f32.mxu0 %v4554_v1 }
 0x367   :  { %3393 = vrot.lane.b32.xlu0 %v3382_v16, %s3466_s22 }
 0x368   :  { %3408 = vrot.lane.b32.xlu1 %v3397_v50, %s3466_s22  ;;  %2671 = vmatmul.mubr.msk.f32.gmra.mrb[22].mxu1 %vm4557_vm12, %v2665_v49  ;;  %vm4569_vm12 = vmmov %vm4556_vm3 }
 0x369   :  { %2669 = vmatmul.mubr.msk.f32.gmra.mrb[22].mxu0 %vm4558_vm15, %v2665_v49  ;;  %1759 = vmatprep.mubr.f32.mxu1 %v4554_v1  ;;  %vm4572_vm15 = vmmov %vm4556_vm3 }
 0x36a   :  { %1682 = vmatprep.mubr.f32.mxu0 %v4554_v1 }
 0x36b   :  { %3413 = vrot.lane.b32.xlu0 %v3387_v20, %s3466_s22 }
 0x36c   :  { %3418 = vrot.lane.b32.xlu1 %v3402_v60, %s3466_s22 }
 0x3d1   :  { %v3384_v14 = vpop.permute.xlu0 %3383 }
 0x3d2   :  { %v3399_v17 = vpop.permute.xlu1 %3398  ;;  %v3386_v6 = vunpack.i.h.bf16 %v3384_v14  ;;  %v3385_v58 = vunpack.i.l.bf16 %v3384_v14 }
 0x3d3   :  { %v3401_v5 = vunpack.i.h.bf16 %v3399_v17  ;;  %v3400_v2 = vunpack.i.l.bf16 %v3399_v17 }
 0x3d5   :  { %v3389_v18 = vpop.permute.xlu0 %3388  ;;  %v1409_v47 = vsel %vm159_vm1, %v3386_v6, %v3401_v5  ;;  %v1408_v7 = vsel %vm159_vm1, %v3385_v58, %v3400_v2 }
 0x3d6   :  { %v3404_v57 = vpop.permute.xlu1 %3403  ;;  %v3390_v55 = vunpack.i.l.bf16 %v3389_v18  ;;  %v3391_v3 = vunpack.i.h.bf16 %v3389_v18 }
 0x3d7   :  { %v3406_v59 = vunpack.i.h.bf16 %v3404_v57  ;;  %v3405_v56 = vunpack.i.l.bf16 %v3404_v57 }
 0x3d8   :  { %v1406_v40 = vsel %vm159_vm1, %v3400_v2, %v3390_v55  ;;  %v1407_v49 = vsel %vm159_vm1, %v3401_v5, %v3391_v3 }
 0x3d9   :  { %v3394_v0 = vpop.permute.xlu0 %3393  ;;  %v1411_v21 = vsel %vm159_vm1, %v3406_v59, %v3386_v6  ;;  %v1410_v61 = vsel %vm159_vm1, %v3405_v56, %v3385_v58  ;;  %v1405_v14 = vsel %vm159_vm1, %v3391_v3, %v3406_v59  ;;  %v1404_v57 = vsel %vm159_vm1, %v3390_v55, %v3405_v56 }
 0x3da   :  { %v3396_v19 = vunpack.i.h.bf16 %v3394_v0  ;;  %v3395_v39 = vunpack.i.l.bf16 %v3394_v0  ;;  %v3409_v45 = vpop.permute.xlu1 %3408  ;;  %vm4559_vm1 = vcmp.ne.f32.partialorder %v3600_v31, 0.0 }
 0x3db   :  { %v3411_v46 = vunpack.i.h.bf16 %v3409_v45  ;;  %v3410_v4 = vunpack.i.l.bf16 %v3409_v45 }
 0x3dd   :  { %v1433_v53 = vsel %vm184_vm2, %v3396_v19, %v3411_v46  ;;  %v1432_v16 = vsel %vm184_vm2, %v3395_v39, %v3410_v4  ;;  %v3414_v20 = vpop.permute.xlu0 %3413 }
 0x3de   :  { %v3416_v11 = vunpack.i.h.bf16 %v3414_v20  ;;  %v3415_v50 = vunpack.i.l.bf16 %v3414_v20  ;;  %v3419_v10 = vpop.permute.xlu1 %3418  ;;  %v1436_v60 = vsel %vm43_vm7, %v1432_v16, %v1410_v61  ;;  %v1440_v54 = vsel %vm47_vm8, %v1433_v53, %v1411_v21  ;;  %v4579_v20 = vld [vmem:[#allocation11_spill] sm:$0xff] }
 0x3df   :  { %v3421_v17 = vunpack.i.h.bf16 %v3419_v10  ;;  %v3420_v18 = vunpack.i.l.bf16 %v3419_v10  ;;  %v3162_v58 = vpack.c.bf16 %v1440_v54, %v1436_v60  ;;  %vm4560_vm7 = vcmp.ne.f32.partialorder %v3605_v32, 0.0  ;;  %v4582_v10 = vld [vmem:[#allocation14_spill] sm:$0xff]  ;;  %v4583_v60 = vld [vmem:[#allocation15_spill] sm:$0xff]  ;;  %v4584_v54 = vld [vmem:[#allocation16_spill] sm:$0xff] }
 0x3e0   :  { %v1430_v6 = vsel %vm184_vm2, %v3410_v4, %v3415_v50  ;;  %v1431_v24 = vsel %vm184_vm2, %v3411_v46, %v3416_v11  ;;  %v1444_v0 = vsel %vm4560_vm7, %v1410_v61, %v1432_v16  ;;  %v1448_v45 = vsel %vm63_vm0, %v1411_v21, %v1433_v53  ;;  %v4575_v21 = vld [vmem:[#allocation7_spill] sm:$0xff]  ;;  %v4576_v61 = vld [vmem:[#allocation8_spill] sm:$0xff]  ;;  %v4577_v53 = vld [vmem:[#allocation9_spill] sm:$0xff] }
 0x3e1   :  { %v1429_v25 = vsel %vm184_vm2, %v3416_v11, %v3421_v17  ;;  %v1435_v5 = vsel %vm184_vm2, %v3421_v17, %v3396_v19  ;;  %v1428_v2 = vsel %vm184_vm2, %v3415_v50, %v3420_v18  ;;  %v1434_v59 = vsel %vm184_vm2, %v3420_v18, %v3395_v39  ;;  %v4578_v16 = vld [vmem:[#allocation10_spill] sm:$0xff]  ;;  %v4580_v11 = vld [vmem:[#allocation12_spill] sm:$0xff]  ;;  %v4581_v50 = vld [vmem:[#allocation13_spill] sm:$0xff] }
 0x3e2   :  { %v1438_v55 = vsel %vm45_vm9, %v1428_v2, %v1406_v40  ;;  %v1442_v56 = vsel %vm4559_vm1, %v1429_v25, %v1407_v49  ;;  %vm4561_vm8 = vcmp.ne.f32.partialorder %v3565_v23, 0.0  ;;  %v1441_v3 = vsel %vm48_vm4, %v1431_v24, %v1409_v47  ;;  %vm4567_vm9 = vmmov %vm4556_vm3  ;;  %v4587_v17 = vld [vmem:[#allocation19_spill] sm:$0xff]  ;;  %v4588_v18 = vld [vmem:[#allocation20_spill] sm:$0xff] }
 0x3e3   :  { %v1437_v19 = vsel %vm4561_vm8, %v1430_v6, %v1408_v7  ;;  %v1439_v22 = vsel %vm46_vm5, %v1434_v59, %v1404_v57  ;;  %v1443_v30 = vsel %vm50_vm6, %v1435_v5, %v1405_v14  ;;  %v3166_v46 = vpack.c.bf16 %v1442_v56, %v1438_v55  ;;  %vm4565_vm5 = vmmov %vm4556_vm3 }
 0x3e4   :  { %v3160_v31 = vpack.c.bf16 %v1441_v3, %v1437_v19  ;;  %v3164_v39 = vpack.c.bf16 %v1443_v30, %v1439_v22  ;;  %vm4562_vm2 = vcmp.ne.f32.partialorder %v3612_v34, 0.0  ;;  %v1446_v38 = vsel %vm61_vm10, %v1406_v40, %v1428_v2  ;;  %vm4566_vm6 = vmmov %vm4556_vm3  ;;  %v4574_v40 = vld [vmem:[#allocation6_spill] sm:$0xff] }
 0x3e5   :  { %v1445_v32 = vsel %vm4562_vm2, %v1408_v7, %v1430_v6  ;;  %v1449_v23 = vsel %vm64_vm13, %v1409_v47, %v1431_v24  ;;  %v1447_v26 = vsel %vm62_vm14, %v1404_v57, %v1434_v59  ;;  %vm4563_vm0 = vcmp.ne.f32.partialorder %v3633_v37, 0.0  ;;  %v1381_v37 = vld [vmem:[%s4466_s2 + $0x8] sm:$0xff]  ;;  %vm4568_vm10 = vmmov %vm4556_vm3  ;;  %v4573_v7 = vld [vmem:[#allocation5_spill] sm:$0xff] }
 0x3e6   :  { %v1451_v27 = vsel %vm4563_vm0, %v1405_v14, %v1435_v5  ;;  %vm4564_vm4 = vcmp.ne.f32.partialorder %v3651_v42, 0.0  ;;  %3161 = vmatprep.subr.bf16.mxu0 %v3160_v31  ;;  %3165 = vmatprep.subr.bf16.mxu1 %v3164_v39  ;;  %v3168_v4 = vpack.c.bf16 %v1449_v23, %v1445_v32  ;;  %v3170_v36 = vpack.c.bf16 %v1448_v45, %v1444_v0  ;;  %v2666_v42 = vld [vmem:[%s4466_s2 + $0x20] sm:$0xff]  ;;  %vm4570_vm13 = vmmov %vm4556_vm3  ;;  %v2667_v47 = vld [vmem:[%s4466_s2 + $0x28] sm:$0xff] }
 0x3e7   :  { %v1450_v28 = vsel %vm4564_vm4, %v1407_v49, %v1429_v25  ;;  %v3172_v34 = vpack.c.bf16 %v1451_v27, %v1447_v26  ;;  %3163 = vmatpush1.bf16.msra.mxu0 %v3162_v58  ;;  %3167 = vmatpush1.bf16.msra.mxu1 %v3166_v46  ;;  %vm4571_vm14 = vmmov %vm4556_vm3  ;;  %v4585_v49 = vld [vmem:[#allocation17_spill] sm:$0xff]  ;;  %v4586_v14 = vld [vmem:[#allocation18_spill] sm:$0xff]  ;;  %vm4594_vm3 = vcmask 1043456   ;;  %vm4601_vm0 = vcmask 31744  }
 0x3e8   :  { %3169 = vmatprep.subr.bf16.mxu0 %v3168_v4  ;;  %v3174_v41 = vpack.c.bf16 %v1450_v28, %v1446_v38  ;;  %v4589_v57 = vld [vmem:[#allocation21_spill] sm:$0xff]  ;;  %v4590_v6 = vld [vmem:[#allocation22_spill] sm:$0xff]  ;;  %v4591_v24 = vld [vmem:[#allocation23_spill] sm:$0xff] }
 0x3e9   :  { %3173 = vmatprep.subr.bf16.mxu1 %v3172_v34  ;;  %v4592_v58 = vld [vmem:[#allocation24_spill] sm:$0xff]  ;;  %vm4596_vm11 = vmmov %vm4594_vm3 }
 0x3ea   :  { %2672 = vmatmul.mubr.msk.f32.vlgmr.msra.gmra.mrb[20].mxu0 %vm4565_vm5, %v1380_v35  ;;  %2674 = vmatmul.mubr.msk.f32.vlgmr.msra.gmra.mrb[20].mxu1 %vm4566_vm6, %v1380_v35  ;;  %vm4597_vm1 = vmmov %vm4594_vm3 }
 0x3eb   :  { %3171 = vmatpush1.bf16.msra.mxu0 %v3170_v36  ;;  %3175 = vmatpush1.bf16.msra.mxu1 %v3174_v41  ;;  %vm4598_vm7 = vmmov %vm4597_vm1 }
 0x3ec   :  { %1688 = vmatprep.mubr.f32.mxu0 %v4554_v1  ;;  %1765 = vmatprep.mubr.f32.mxu1 %v4554_v1  ;;  %vm4599_vm8 = vmmov %vm4597_vm1 }
 0x3ed   :  { %3177 = vmatprep.subr.bf16.mxu0 %v3741_v62  ;;  %3209 = vmatprep.subr.bf16.mxu1 %v3743_v63  ;;  %vm4600_vm2 = vmmov %vm4597_vm1 }
 0x3ee   :  { %2673 = vmatmul.mubr.msk.f32.gmra.mrb[22].mxu0 %vm4567_vm9, %v1381_v37  ;;  %2675 = vmatmul.mubr.msk.f32.gmra.mrb[22].mxu1 %vm4568_vm10, %v1381_v37  ;;  %vm4602_vm4 = vmmov %vm4601_vm0 }
 0x3ef   :  { %1842 = vmatprep.mubr.f32.mxu0 %v4554_v1  ;;  %1919 = vmatprep.mubr.f32.mxu1 %v4554_v1  ;;  %vm4603_vm5 = vmmov %vm4597_vm1 }
 0x3f0   :  { %vm4604_vm6 = vmmov %vm4597_vm1 }
 0x3f1   :  { %vm4605_vm9 = vmmov %vm4601_vm0 }
 0x3f2   :  { %2676 = vmatmul.mubr.msk.f32.vlgmr.msra.gmra.mrb[20].mxu0 %vm4569_vm12, %v2666_v42  ;;  %2678 = vmatmul.mubr.msk.f32.vlgmr.msra.gmra.mrb[20].mxu1 %vm4570_vm13, %v2666_v42  ;;  %vm4606_vm10 = vmmov %vm4601_vm0 }
 0x3f3   :  { %1848 = vmatprep.mubr.f32.mxu0 %v4554_v1  ;;  %1925 = vmatprep.mubr.f32.mxu1 %v4554_v1  ;;  %vm4607_vm12 = vmmov %vm4601_vm0 }
 0x3f4   :  { %3179 = vmatpush3.bf16.msra.mxu0 %v3785_v8  ;;  %3211 = vmatpush3.bf16.msra.mxu1 %v3787_v9  ;;  %vm4608_vm13 = vmmov %vm4601_vm0 }
 0x3f5   :  { %3181 = vmatprep.subr.bf16.mxu0 %v3795_v12  ;;  %3213 = vmatprep.subr.bf16.mxu1 %v3797_v13 }
 0x3f6   :  { %2677 = vmatmul.mubr.msk.f32.gmra.mrb[22].mxu0 %vm4571_vm14, %v2667_v47  ;;  %2679 = vmatmul.mubr.msk.f32.gmra.mrb[22].mxu1 %vm4572_vm15, %v2667_v47  ;;  %vm4609_vm14 = vmmov %vm4601_vm0 }
 0x3f7   :  { %vm4610_vm15 = vmmov %vm4601_vm0 }
 0x3f8   :  { %3183 = vmatpush3.bf16.msra.mxu0 %v3826_v29  ;;  %3215 = vmatpush3.bf16.msra.mxu1 %v3828_v33 }
 0x3f9   :  { %3185 = vmatprep.subr.bf16.mxu0 %v3838_v43  ;;  %3217 = vmatprep.subr.bf16.mxu1 %v3840_v44 }
 0x3fc   :  { %3187 = vmatpush3.bf16.msra.mxu0 %v3864_v51  ;;  %3219 = vmatpush3.bf16.msra.mxu1 %v3866_v52 }
 0x3fd   :  { %3189 = vmatprep.subr.bf16.mxu0 %v4573_v7  ;;  %3221 = vmatprep.subr.bf16.mxu1 %v4574_v40 }
 0x400   :  { %3191 = vmatpush3.bf16.msra.mxu0 %v4575_v21  ;;  %3223 = vmatpush3.bf16.msra.mxu1 %v4576_v61 }
 0x401   :  { %3193 = vmatprep.subr.bf16.mxu0 %v4577_v53  ;;  %3225 = vmatprep.subr.bf16.mxu1 %v4578_v16 }
 0x404   :  { %3195 = vmatpush3.bf16.msra.mxu0 %v4579_v20  ;;  %3227 = vmatpush3.bf16.msra.mxu1 %v4580_v11 }
 0x405   :  { %3197 = vmatprep.subr.bf16.mxu0 %v4581_v50  ;;  %3229 = vmatprep.subr.bf16.mxu1 %v4582_v10 }
 0x408   :  { %3199 = vmatpush3.bf16.msra.mxu0 %v4583_v60  ;;  %3231 = vmatpush3.bf16.msra.mxu1 %v4584_v54 }
 0x409   :  { %3201 = vmatprep.subr.bf16.mxu0 %v4585_v49  ;;  %3233 = vmatprep.subr.bf16.mxu1 %v4586_v14 }
 0x40c   :  { %3203 = vmatpush3.bf16.msra.mxu0 %v4587_v17  ;;  %3235 = vmatpush3.bf16.msra.mxu1 %v4588_v18 }
 0x40d   :  { %3205 = vmatprep.subr.bf16.mxu0 %v4589_v57  ;;  %3237 = vmatprep.subr.bf16.mxu1 %v4590_v6 }
 0x410   :  { %3207 = vmatpush3.bf16.msra.mxu0 %v4591_v24  ;;  %3239 = vmatpush3.bf16.msra.mxu1 %v4592_v58 }
 0x411   :  { %3241 = vmatprep.subr.bf16.mxu0 %v3741_v62  ;;  %3273 = vmatprep.subr.bf16.mxu1 %v3743_v63 }
 0x4c5   :  { %v4318_v25 = vpop.f32.mrb[20].mxu0  ;;  %v4320_v5 = vpop.f32.mrb[20].mxu1 }
 0x4c6   :  { %v4322_v2 = vpop.f32.mrb[21].mxu0  ;;  %v4324_v59 = vpop.f32.mrb[21].mxu1 }
 0x4c7   :  { %2004 = vmatprep.mubr.f32.mxu0 %v4322_v2  ;;  %2079 = vmatprep.mubr.f32.mxu1 %v4324_v59  ;;  %v2091_v0 = vmul.f32 %v4322_v2, %v4322_v2 }
 0x4c8   :  { %2005 = vmatmul.mubr.f32.vlgmr.msra.gmra.mrb[24].mxu0 %v4318_v25  ;;  %2080 = vmatmul.mubr.f32.vlgmr.msra.gmra.mrb[24].mxu1 %v4320_v5 }
 0x4c9   :  { %3243 = vmatpush3.bf16.msra.mxu0 %v3785_v8  ;;  %v4331_v62 = vpop.f32.mrb[22].mxu0  ;;  %3275 = vmatpush3.bf16.msra.mxu1 %v3787_v9  ;;  %v4334_v63 = vpop.f32.mrb[22].mxu1  ;;  %v2093_v8 = vmul.f32 %v4324_v59, %v4324_v59  ;;  %v2090_v9 = vmul.f32 %v4318_v25, %v4318_v25 }
 0x4ca   :  { %v4336_v55 = vpop.f32.mrb[23].mxu0  ;;  %v4338_v56 = vpop.f32.mrb[23].mxu1  ;;  %3245 = vmatprep.subr.bf16.mxu0 %v3795_v12  ;;  %3277 = vmatprep.subr.bf16.mxu1 %v3797_v13  ;;  %v4593_v12 = vld [vmem:[#allocation25_spill] sm:$0xff]  ;;  %v2092_v13 = vmul.f32 %v4320_v5, %v4320_v5 }
 0x4cb   :  { %2009 = vmatprep.mubr.f32.mxu0 %v4336_v55  ;;  %2084 = vmatprep.mubr.f32.mxu1 %v4338_v56 }
 0x4cc   :  { %2010 = vmatmul.mubr.f32.gmra.mrb[26].mxu0 %v4331_v62  ;;  %2085 = vmatmul.mubr.f32.gmra.mrb[26].mxu1 %v4334_v63 }
 0x4cd   :  { %3247 = vmatpush3.bf16.msra.mxu0 %v3826_v29  ;;  %2162 = vmatprep.mubr.f32.mxu0 %v2091_v0  ;;  %v2095_v29 = vmul.f32 %v4336_v55, %v4336_v55 }
 0x4ce   :  { %3279 = vmatpush3.bf16.msra.mxu1 %v3828_v33  ;;  %2237 = vmatprep.mubr.f32.mxu1 %v2093_v8  ;;  %v4595_v33 = vld [vmem:[#allocation26_spill] sm:$0xff] }
 0x4cf   :  { %3249 = vmatprep.subr.bf16.mxu0 %v3838_v43  ;;  %3281 = vmatprep.subr.bf16.mxu1 %v3840_v44  ;;  %v2097_v43 = vmul.f32 %v4338_v56, %v4338_v56  ;;  %v2094_v44 = vmul.f32 %v4331_v62, %v4331_v62 }
 0x4d1   :  { %3251 = vmatpush3.bf16.msra.mxu0 %v3864_v51  ;;  %v2096_v51 = vmul.f32 %v4334_v63, %v4334_v63 }
 0x4d2   :  { %3283 = vmatpush3.bf16.msra.mxu1 %v3866_v52  ;;  %3253 = vmatprep.subr.bf16.mxu0 %v4573_v7 }
 0x4d3   :  { %3285 = vmatprep.subr.bf16.mxu1 %v4574_v40 }
 0x4d5   :  { %3255 = vmatpush3.bf16.msra.mxu0 %v4575_v21 }
 0x4d6   :  { %3287 = vmatpush3.bf16.msra.mxu1 %v4576_v61  ;;  %3257 = vmatprep.subr.bf16.mxu0 %v4577_v53 }
 0x4d7   :  { %3289 = vmatprep.subr.bf16.mxu1 %v4578_v16 }
 0x4d9   :  { %3259 = vmatpush3.bf16.msra.mxu0 %v4579_v20 }
 0x4da   :  { %3291 = vmatpush3.bf16.msra.mxu1 %v4580_v11  ;;  %3261 = vmatprep.subr.bf16.mxu0 %v4581_v50 }
 0x4db   :  { %3293 = vmatprep.subr.bf16.mxu1 %v4582_v10 }
 0x4dd   :  { %3263 = vmatpush3.bf16.msra.mxu0 %v4583_v60 }
 0x4de   :  { %3295 = vmatpush3.bf16.msra.mxu1 %v4584_v54  ;;  %3265 = vmatprep.subr.bf16.mxu0 %v4585_v49 }
 0x4df   :  { %3297 = vmatprep.subr.bf16.mxu1 %v4586_v14 }
 0x4e1   :  { %3267 = vmatpush3.bf16.msra.mxu0 %v4587_v17 }
 0x4e2   :  { %3299 = vmatpush3.bf16.msra.mxu1 %v4588_v18  ;;  %3269 = vmatprep.subr.bf16.mxu0 %v4589_v57 }
 0x4e3   :  { %3301 = vmatprep.subr.bf16.mxu1 %v4590_v6 }
 0x4e5   :  { %3271 = vmatpush3.bf16.msra.mxu0 %v4591_v24 }
 0x4e6   :  { %3303 = vmatpush3.bf16.msra.mxu1 %v4592_v58  ;;  %2680 = vmatprep.subr.msk.mxu0 %vm4594_vm3, %v4593_v12 }
 0x4e7   :  { %2684 = vmatprep.subr.msk.mxu1 %vm4596_vm11, %v4595_v33 }
 0x4e8   :  { %2163 = vmatmul.mubr.f32.vlgmr.msra.gmra.mrb[28].mxu0 %v2090_v9 }
 0x4e9   :  { %2167 = vmatprep.mubr.f32.mxu0 %v2095_v29  ;;  %2238 = vmatmul.mubr.f32.vlgmr.msra.gmra.mrb[28].mxu1 %v2092_v13 }
 0x4ea   :  { %2242 = vmatprep.mubr.f32.mxu1 %v2097_v43  ;;  %2681 = vmatpush1.msk.msra.mxu0 %vm4597_vm1, %v4117_v48 }
 0x4eb   :  { %2685 = vmatpush1.msk.msra.mxu1 %vm4598_vm7, %v4122_v15  ;;  %2688 = vmatprep.subr.msk.mxu0 %vm4599_vm8, %v4593_v12 }
 0x4ec   :  { %2168 = vmatmul.mubr.f32.gmra.mrb[30].mxu0 %v2094_v44  ;;  %2692 = vmatprep.subr.msk.mxu1 %vm4600_vm2, %v4595_v33 }
 0x4ed   :  { %2243 = vmatmul.mubr.f32.gmra.mrb[30].mxu1 %v2096_v51  ;;  %2332 = vmatprep.mubr.f32.mxu0 %v4554_v1 }
 0x4ee   :  { %2409 = vmatprep.mubr.f32.mxu1 %v4554_v1 }
 0x59b   :  { %v2880_v52 = vpop.f32.mrb[24].mxu0  ;;  %v2918_v45 = vpop.f32.mrb[24].mxu1 }
 0x59c   :  { %v2881_v19 = vpop.f32.mrb[25].mxu0  ;;  %v2919_v3 = vpop.f32.mrb[25].mxu1 }
 0x59d   :  { %v2882_v22 = vadd.f32 %v2881_v19, %v2880_v52  ;;  %v2920_v30 = vadd.f32 %v2919_v3, %v2918_v45 }
 0x59f   :  { %v2082_v31 = vadd.f32 %v2920_v30, %v2882_v22  ;;  %v2883_v39 = vpop.f32.mrb[26].mxu0  ;;  %v2921_v46 = vpop.f32.mrb[26].mxu1 }
 0x5a0   :  { %v2884_v32 = vpop.f32.mrb[27].mxu0  ;;  %v2922_v38 = vpop.f32.mrb[27].mxu1 }
 0x5a1   :  { %v2885_v23 = vadd.f32 %v2884_v32, %v2883_v39  ;;  %v2923_v26 = vadd.f32 %v2922_v38, %v2921_v46  ;;  %v2248_v41 = vmul.f32 0.0078125, %v2082_v31  ;;  %v3435_v38 = vld [vmem:[%s4464_s0 + $0x18] sm:$0xff] }
 0x5a3   :  { %v2087_v27 = vadd.f32 %v2923_v26, %v2885_v23  ;;  %v2252_v53 = vmul.f32 %v2248_v41, %v2248_v41 }
 0x5a5   :  { %v2249_v16 = vmul.f32 0.0078125, %v2087_v27 }
 0x5a7   :  { %v2253_v60 = vmul.f32 %v2249_v16, %v2249_v16 }
 0x5bb   :  { %v2956_v28 = vpop.f32.mrb[28].mxu0 }
 0x5bc   :  { %v2957_v4 = vpop.f32.mrb[29].mxu0  ;;  %v2994_v34 = vpop.f32.mrb[28].mxu1 }
 0x5bd   :  { %v2958_v35 = vadd.f32 %v2957_v4, %v2956_v28  ;;  %v2995_v36 = vpop.f32.mrb[29].mxu1 }
 0x5be   :  { %v2996_v37 = vadd.f32 %v2995_v36, %v2994_v34 }
 0x5bf   :  { %v2959_v42 = vpop.f32.mrb[30].mxu0 }
 0x5c0   :  { %v2240_v47 = vadd.f32 %v2996_v37, %v2958_v35  ;;  %v2960_v7 = vpop.f32.mrb[31].mxu0  ;;  %v2997_v40 = vpop.f32.mrb[30].mxu1  ;;  %v3436_v37 = vld [vmem:[%s4464_s0 + $0x20] sm:$0xff] }
 0x5c1   :  { %v2961_v21 = vadd.f32 %v2960_v7, %v2959_v42  ;;  %v2998_v61 = vpop.f32.mrb[31].mxu1 }
 0x5c2   :  { %v2250_v20 = vmul.f32 0.0078125, %v2240_v47  ;;  %v2999_v11 = vadd.f32 %v2998_v61, %v2997_v40  ;;  %v3437_v47 = vld [vmem:[%s4464_s0 + $0x30] sm:$0xff]  ;;  %v3438_v40 = vld [vmem:[%s4464_s0 + $0x28] sm:$0xff]  ;;  %v3439_v61 = vld [vmem:[%s4464_s0 + $0x38] sm:$0xff] }
 0x5c4   :  { %v2254_v50 = vsub.f32 %v2250_v20, %v2252_v53  ;;  %v2245_v10 = vadd.f32 %v2999_v11, %v2961_v21 }
 0x5c6   :  { %v2256_v54 = vmax.f32 %v2254_v50, 0.0  ;;  %v2251_v49 = vmul.f32 0.0078125, %v2245_v10 }
 0x5c8   :  { %v2258_v14 = vadd.f32 1e-05, %v2256_v54  ;;  %v2255_v17 = vsub.f32 %v2251_v49, %v2253_v60 }
 0x5ca   :  { %3428 = vrsqrt.f32 %v2258_v14  ;;  %v2257_v18 = vmax.f32 %v2255_v17, 0.0 }
 0x5cc   :  { %v2259_v57 = vadd.f32 1e-05, %v2257_v18 }
 0x5ce   :  { %3430 = vrsqrt.f32 %v2259_v57 }
 0x5d4   :  { %v3429_v6 = vpop.eup %3428 }
 0x5d5   :  { %2682 = vmatmul.mubr.msk.f32.vlgmr.msra.gmra.mrb[32].mxu0 %vm4601_vm0, %v3429_v6  ;;  %2686 = vmatmul.mubr.msk.f32.vlgmr.msra.gmra.mrb[32].mxu1 %vm4602_vm4, %v3429_v6  ;;  %v2422_v24 = vmul.f32 %v3429_v6, %v2248_v41 }
 0x5d6   :  { %2338 = vmatprep.mubr.f32.mxu0 %v4554_v1  ;;  %2415 = vmatprep.mubr.f32.mxu1 %v4554_v1 }
 0x5d7   :  { %2689 = vmatpush1.msk.msra.mxu0 %vm4603_vm5, %v4117_v48  ;;  %2693 = vmatpush1.msk.msra.mxu1 %vm4604_vm6, %v4122_v15 }
 0x5d8   :  { %v3431_v58 = vpop.eup %3430 }
 0x5d9   :  { %2683 = vmatmul.mubr.msk.f32.gmra.mrb[34].mxu0 %vm4605_vm9, %v3431_v58  ;;  %2687 = vmatmul.mubr.msk.f32.gmra.mrb[34].mxu1 %vm4606_vm10, %v3431_v58  ;;  %v2423_v0 = vmul.f32 %v3431_v58, %v2249_v16 }
 0x5da   :  { %2494 = vmatprep.mubr.f32.mxu0 %v4554_v1  ;;  %2571 = vmatprep.mubr.f32.mxu1 %v4554_v1 }
 0x5dd   :  { %2690 = vmatmul.mubr.msk.f32.vlgmr.msra.gmra.mrb[36].mxu0 %vm4607_vm12, %v2422_v24  ;;  %2694 = vmatmul.mubr.msk.f32.vlgmr.msra.gmra.mrb[36].mxu1 %vm4608_vm13, %v2422_v24 }
 0x5de   :  { %2500 = vmatprep.mubr.f32.mxu0 %v4554_v1  ;;  %2577 = vmatprep.mubr.f32.mxu1 %v4554_v1 }
 0x5e1   :  { %2691 = vmatmul.mubr.msk.f32.gmra.mrb[38].mxu0 %vm4609_vm14, %v2423_v0  ;;  %2695 = vmatmul.mubr.msk.f32.gmra.mrb[38].mxu1 %vm4610_vm15, %v2423_v0 }
 0x6a8   :  { %v2334_v48 = vpop.f32.mrb[32].mxu0  ;;  %v2411_v15 = vpop.f32.mrb[32].mxu1 }
 0x6a9   :  { %v2584_v8 = vmul.f32 %v2334_v48, %v4318_v25  ;;  %v2586_v9 = vmul.f32 %v2411_v15, %v4320_v5  ;;  %v2336_v12 = vpop.f32.mrb[33].mxu0  ;;  %v2413_v13 = vpop.f32.mrb[33].mxu1 }
 0x6aa   :  { %v2585_v29 = vmul.f32 %v2336_v12, %v4322_v2  ;;  %v2587_v33 = vmul.f32 %v2413_v13, %v4324_v59 }
 0x6ac   :  { %v2340_v43 = vpop.f32.mrb[34].mxu0  ;;  %v2417_v44 = vpop.f32.mrb[34].mxu1 }
 0x6ad   :  { %v2588_v1 = vmul.f32 %v2340_v43, %v4331_v62  ;;  %v2590_v51 = vmul.f32 %v2417_v44, %v4334_v63  ;;  %v2342_v52 = vpop.f32.mrb[35].mxu0  ;;  %v2419_v45 = vpop.f32.mrb[35].mxu1  ;;  %v3432_v62 = vld [vmem:[%s4464_s0] sm:$0xff]  ;;  %v3433_v63 = vld [vmem:[%s4464_s0 + $0x10] sm:$0xff] }
 0x6ae   :  { %v2589_v19 = vmul.f32 %v2342_v52, %v4336_v55  ;;  %v2591_v25 = vmul.f32 %v2419_v45, %v4338_v56  ;;  %v3434_v56 = vld [vmem:[%s4464_s0 + $0x8] sm:$0xff] }
 0x6b0   :  { %v2496_v3 = vpop.f32.mrb[36].mxu0  ;;  %v2573_v5 = vpop.f32.mrb[36].mxu1 }
 0x6b1   :  { %v2592_v22 = vsub.f32 %v2584_v8, %v2496_v3  ;;  %v2594_v30 = vsub.f32 %v2586_v9, %v2573_v5  ;;  %v2498_v31 = vpop.f32.mrb[37].mxu0  ;;  %v2575_v2 = vpop.f32.mrb[37].mxu1 }
 0x6b2   :  { %v2593_v39 = vsub.f32 %v2585_v29, %v2498_v31  ;;  %v2595_v59 = vsub.f32 %v2587_v33, %v2575_v2 }
 0x6b3   :  { %v2600_v46 = vadd.f32 %v3432_v62, %v2592_v22  ;;  %v2602_v55 = vadd.f32 %v3433_v63, %v2594_v30 }
 0x6b4   :  { %v2601_v32 = vadd.f32 %v3434_v56, %v2593_v39  ;;  %v2603_v23 = vadd.f32 %v3435_v38, %v2595_v59  ;;  %v2502_v26 = vpop.f32.mrb[38].mxu0  ;;  %v2579_v27 = vpop.f32.mrb[38].mxu1 }
 0x6b5   :  { %2608 = vst [vmem:[#allocation2] sm:$0xff] %v2600_v46  ;;  %2610 = vst [vmem:[#allocation2 + $0x10] sm:$0xff] %v2602_v55  ;;  %v2596_v28 = vsub.f32 %v2588_v1, %v2502_v26  ;;  %v2598_v4 = vsub.f32 %v2590_v51, %v2579_v27  ;;  %v2504_v34 = vpop.f32.mrb[39].mxu0  ;;  %v2581_v35 = vpop.f32.mrb[39].mxu1 }
 0x6b6   :  { %2609 = vst [vmem:[#allocation2 + $0x8] sm:$0xff] %v2601_v32  ;;  %2611 = vst [vmem:[#allocation2 + $0x18] sm:$0xff] %v2603_v23  ;;  %v2597_v36 = vsub.f32 %v2589_v19, %v2504_v34  ;;  %v2599_v41 = vsub.f32 %v2591_v25, %v2581_v35 }
 0x6b7   :  { %v2604_v42 = vadd.f32 %v3436_v37, %v2596_v28  ;;  %v2606_v7 = vadd.f32 %v3437_v47, %v2598_v4 }
 0x6b8   :  { %v2605_v21 = vadd.f32 %v3438_v40, %v2597_v36  ;;  %v2607_v53 = vadd.f32 %v3439_v61, %v2599_v41 }
 0x6b9   :  { %2612 = vst [vmem:[#allocation2 + $0x20] sm:$0xff] %v2604_v42  ;;  %2614 = vst [vmem:[#allocation2 + $0x30] sm:$0xff] %v2606_v7 }
 0x6ba   :  { %2613 = vst [vmem:[#allocation2 + $0x28] sm:$0xff] %v2605_v21  ;;  %2615 = vst [vmem:[#allocation2 + $0x38] sm:$0xff] %v2607_v53 }
 0x6bb   :  { %3451 = shalt.err (!%p3448_p4)
}
 0x6bc   :  { %s3452_s17 = scalar_lea.hbm %s4471_s7, 1024 }
 0x6bd   :  { %p3453_p5 = scmp.ne.s32.totalorder %s4471_s7, %s3452_s17  ;;  %p3456_p6 = scmp.lt.u32.totalorder %s3452_s17, %s4471_s7 }
 0x6bf   :  { %p3458_p7 = pnand %p3456_p6, %p3453_p5 }
 0x6c1   :  { %3461 = shalt.err (!%p3458_p7)
}
 0x6c2   :  { %s3468_s11 = smov 512   ;;  %s3469_s12 = smov 32  }
 0x6c3   :  { %2627 = dma.vmem_to_hbm [thread:$0]  %s2622_s3, 1024, %s4471_s7, [#allocation3], %s3468_s11, %s3468_s11, %s3469_s12  }
 0x6c4   :  { %3462 = dma.done.wait [#allocation3], 1024  }
 0x6c5   :  { %3463 = vsyncadd [#allocation3], 4294966272 }
 0x6c6   :  { %2631 = vsyncpa [#allocation3], 1 }

</bundles_post_ra>
